<compile_context>
chip_gen: v6e
topology: v6e:2x2x1
jax: 0.10.0
libtpu: 0.0.40
codegen_flags: <defaults>
</compile_context>

<pallas_src>
import functools

import jax
import jax.numpy as jnp
from jax.experimental import pallas as pl
from jax.experimental.pallas import tpu as pltpu

H1 = 512      # ks1 out features
H2 = 256      # ks2 out features
C_PAD = 128   # lane-dense padded class dimension


def _head_kernel(x_ref, w1_ref, b1_ref, w2_ref, b2_ref, w3_ref, b3_ref, o_ref):
    # x_ref : bf16 [tb, H]  CLS rows (pooled wrapper-side, contiguous in HBM)
    # w*_ref: bf16 [in, out] (== PyTorch weight^T), VMEM-resident across tiles
    # b*_ref: fp32 [1, out]
    # o_ref : fp32 [tb, C_PAD] (lane-dense)
    x = x_ref[...]
    h1 = jnp.dot(x, w1_ref[...], preferred_element_type=jnp.float32)
    h1 = jnp.maximum(h1 + b1_ref[...], 0.0)                      # ks1 + ReLU (fp32)
    h2 = jnp.dot(h1.astype(jnp.bfloat16), w2_ref[...],
                 preferred_element_type=jnp.float32)
    h2 = jnp.maximum(h2 + b2_ref[...], 0.0)                      # ks2 + ReLU (fp32)
    logits = jnp.dot(h2.astype(jnp.bfloat16), w3_ref[...],
                     preferred_element_type=jnp.float32)
    o_ref[...] = logits + b3_ref[...]                            # classifier (+ padded lanes)


def _round_up(x, m):
    return (x + m - 1) // m * m


def _vmem_capacity_bytes():
    try:
        return int(pltpu.get_tpu_info().vmem_capacity_bytes)
    except Exception:
        return 64 << 20          # conservative (v7x physical VMEM per TC)


def _num_tensorcores_per_chip():
    try:
        kind = jax.devices()[0].device_kind.lower()
        if "v7" in kind:
            return 2
    except Exception:
        pass
    return 1                     # v5e / v6e: single TensorCore per chip


def _weight_vmem_bytes(H):
    # single-buffered bf16 weights + fp32 biases (each [1,N] pads to 8 sublanes)
    return (H * H1 + H1 * H2 + H2 * C_PAD) * 2 + 8 * (H1 + H2 + C_PAD) * 4


def _per_row_vmem_bytes(H):
    # double-buffered bf16 input rows + double-buffered fp32 output rows
    return 2 * H * 2 + 2 * C_PAD * 4


def _choose_tile(B, H):
    """Batch-tile size: >=2 tiles on dual-TC chips, one maximal tile otherwise,
    capped so buffers fit comfortably in VMEM."""
    B16 = _round_up(max(B, 1), 16)                  # bf16 sublane packing
    budget = int(_vmem_capacity_bytes() * 0.5)
    avail = budget - _weight_vmem_bytes(H) - (2 << 20)
    tb_vmem = max(16, (avail // _per_row_vmem_bytes(H)) // 16 * 16)

    if _num_tensorcores_per_chip() >= 2 and B16 >= 32:
        tb = _round_up(pl.cdiv(B16, 2), 16)         # feed both TensorCores
    else:
        tb = B16                                    # single TC: one big tile
    tb = max(16, min(tb, tb_vmem))
    B_pad = _round_up(B16, tb)
    return tb, B_pad


def _make_specs(H, tb, single_buffer_weights):
    wkw = {"pipeline_mode": pl.Buffered(1)} if single_buffer_weights else {}
    const = lambda i: (0, 0)
    in_specs = [
        # Contiguous bf16 CLS rows, tiled along batch.
        pl.BlockSpec((tb, H), lambda i: (i, 0)),
        # Weights / biases: constant index_map => resident across all B-tiles.
        pl.BlockSpec((H, H1), const, **wkw),
        pl.BlockSpec((1, H1), const, **wkw),
        pl.BlockSpec((H1, H2), const, **wkw),
        pl.BlockSpec((1, H2), const, **wkw),
        pl.BlockSpec((H2, C_PAD), const, **wkw),
        pl.BlockSpec((1, C_PAD), const, **wkw),
    ]
    out_specs = pl.BlockSpec((tb, C_PAD), lambda i: (i, 0))
    return in_specs, out_specs


@functools.partial(jax.jit, static_argnames=("num_classes", "single_buffer_weights"))
def _forward_impl(last_hidden_state, kparams, *, num_classes, single_buffer_weights):
    B, S, H = last_hidden_state.shape

    # CLS pooling + bf16 cast in the wrapper: the kernel then streams one
    # contiguous bf16 [B_pad, H] slab (half the fp32 bytes, no strided gather).
    pooled = last_hidden_state[:, 0, :].astype(jnp.bfloat16)
    # dropout(p=0.15) -> identity in eval mode.

    tb, B_pad = _choose_tile(B, H)
    if B_pad != B:
        pooled = jnp.pad(pooled, ((0, B_pad - B), (0, 0)))

    w1, b1 = kparams["w1"], kparams["b1"]
    w2, b2 = kparams["w2"], kparams["b2"]
    w3, b3 = kparams["w3"], kparams["b3"]

    flops = 2 * B_pad * (H * H1 + H1 * H2 + H2 * C_PAD)
    bytes_accessed = (
        B_pad * H * 2                              # bf16 CLS rows in
        + (H * H1 + H1 * H2 + H2 * C_PAD) * 2      # bf16 weights
        + (H1 + H2 + C_PAD) * 4                    # fp32 biases
        + B_pad * C_PAD * 4)                       # fp32 logits out

    vmem_used = _weight_vmem_bytes(H) + _per_row_vmem_bytes(H) * tb + (4 << 20)
    vmem_limit = int(min(int(_vmem_capacity_bytes() * 0.98),
                         max(vmem_used, 16 << 20)))

    in_specs, out_specs = _make_specs(H, tb, single_buffer_weights)

    logits = pl.pallas_call(
        _head_kernel,
        out_shape=jax.ShapeDtypeStruct((B_pad, C_PAD), jnp.float32),
        grid=(B_pad // tb,),
        in_specs=in_specs,
        out_specs=out_specs,
        compiler_params=pltpu.CompilerParams(
            dimension_semantics=("parallel",),     # shards B-tiles over v7x's 2 TCs
            vmem_limit_bytes=vmem_limit),
        cost_estimate=pl.CostEstimate(
            flops=flops, transcendentals=0, bytes_accessed=bytes_accessed),
    )(pooled, w1, b1, w2, b2, w3, b3)

    # Slice back to the true batch and the true number of classes.
    return logits[:B, :num_classes]


def text_classification_forward(last_hidden_state, kparams, *, num_classes):
    """Mirrors TextClassificationModel.forward in eval mode, given the
    base_model's last_hidden_state [B, S, H]."""
    try:
        return _forward_impl(last_hidden_state, kparams,
                             num_classes=num_classes, single_buffer_weights=True)
    except Exception:
        # Fallback if this JAX build rejects pl.Buffered(1) single-buffering.
        return _forward_impl(last_hidden_state, kparams,
                             num_classes=num_classes, single_buffer_weights=False)


def prepare_head_params(params):
    """Kernel-ready params: bf16 weights, lane-dense (C padded to 128)
    classifier, fp32 biases. Done once, outside the hot path."""
    w3, b3 = params["w3"], params["b3"]
    C = w3.shape[1]
    w3p = jnp.zeros((H2, C_PAD), jnp.float32).at[:, :C].set(w3)
    b3p = jnp.zeros((1, C_PAD), jnp.float32).at[:, :C].set(b3)
    return {
        "w1": params["w1"].astype(jnp.bfloat16),
        "b1": params["b1"].astype(jnp.float32),
        "w2": params["w2"].astype(jnp.bfloat16),
        "b2": params["b2"].astype(jnp.float32),
        "w3": w3p.astype(jnp.bfloat16),
        "b3": b3p,
    }


def init_params(key, hidden_size, num_classes):
    """Deterministic init matching PyTorch nn.Linear default U(-1/sqrt(fan_in), +)."""
    def linear(k, fan_in, fan_out):
        kw, kb = jax.random.split(k)
        bound = 1.0 / jnp.sqrt(float(fan_in))
        # Stored as [in, out] == PyTorch weight^T so the kernel does x @ W.
        w = jax.random.uniform(kw, (fan_in, fan_out), jnp.float32, -bound, bound)
        b = jax.random.uniform(kb, (1, fan_out), jnp.float32, -bound, bound)
        return w, b

    k1, k2, k3 = jax.random.split(key, 3)
    w1, b1 = linear(k1, hidden_size, H1)
    w2, b2 = linear(k2, H1, H2)
    w3, b3 = linear(k3, H2, num_classes)
    return {"w1": w1, "b1": b1, "w2": w2, "b2": b2, "w3": w3, "b3": b3}


if __name__ == "__main__":
    B, S, H = 8, 8, 128          # batch, seq, base_model hidden_size
    NUM_CLASSES = 8

    key = jax.random.PRNGKey(0)
    k_x, k_p = jax.random.split(key)

    # Stand-in for base_model(**inputs).last_hidden_state
    last_hidden_state = jax.random.normal(k_x, (B, S, H), dtype=jnp.float32)
    params = init_params(k_p, H, NUM_CLASSES)
    kparams = prepare_head_params(params)

    logits = text_classification_forward(
        last_hidden_state, kparams, num_classes=NUM_CLASSES)
    jax.block_until_ready(logits)

    # Pure-JAX reference with the same bf16-weight / fp32-accumulate numerics.
    pooled = last_hidden_state[:, 0, :]
    xb = pooled.astype(jnp.bfloat16)
    h1 = jnp.maximum(
        jnp.dot(xb, params["w1"].astype(jnp.bfloat16),
                preferred_element_type=jnp.float32) + params["b1"], 0.0)
    h2 = jnp.maximum(
        jnp.dot(h1.astype(jnp.bfloat16), params["w2"].astype(jnp.bfloat16),
                preferred_element_type=jnp.float32) + params["b2"], 0.0)
    ref = jnp.dot(h2.astype(jnp.bfloat16), params["w3"].astype(jnp.bfloat16),
                  preferred_element_type=jnp.float32) + params["b3"]

    assert logits.shape == (B, NUM_CLASSES)
    assert jnp.allclose(logits, ref, atol=1e-2, rtol=1e-2), "mismatch vs reference"

    print("KERNEL_OK")
</pallas_src>

<mosaic_0001>
module attributes {stable_mosaic.version = 11 : i64} {
  func.func @_head_kernel(%arg0: i32, %arg1: memref<16x128xbf16, #tpu.memory_space<vmem>>, %arg2: memref<128x512xbf16, #tpu.memory_space<vmem>>, %arg3: memref<1x512xf32, #tpu.memory_space<vmem>>, %arg4: memref<512x256xbf16, #tpu.memory_space<vmem>>, %arg5: memref<1x256xf32, #tpu.memory_space<vmem>>, %arg6: memref<256x128xbf16, #tpu.memory_space<vmem>>, %arg7: memref<1x128xf32, #tpu.memory_space<vmem>>, %arg8: memref<16x128xf32, #tpu.memory_space<vmem>>) attributes {dimension_semantics = [#tpu.dimension_semantics<parallel>], iteration_bounds = array<i64: 1>, scalar_prefetch = 0 : i64, scratch_operands = 0 : i64, tpu.core_type = #tpu.core_type<tc>, window_params = [{transform_indices = @transform_0, window_bounds = array<i64: 16, 128>}, {pipeline_mode = #tpu.pipeline_mode<synchronous>, transform_indices = @transform_1, window_bounds = array<i64: 128, 512>}, {pipeline_mode = #tpu.pipeline_mode<synchronous>, transform_indices = @transform_2, window_bounds = array<i64: 1, 512>}, {pipeline_mode = #tpu.pipeline_mode<synchronous>, transform_indices = @transform_3, window_bounds = array<i64: 512, 256>}, {pipeline_mode = #tpu.pipeline_mode<synchronous>, transform_indices = @transform_4, window_bounds = array<i64: 1, 256>}, {pipeline_mode = #tpu.pipeline_mode<synchronous>, transform_indices = @transform_5, window_bounds = array<i64: 256, 128>}, {pipeline_mode = #tpu.pipeline_mode<synchronous>, transform_indices = @transform_6, window_bounds = array<i64: 1, 128>}, {transform_indices = @transform_7, window_bounds = array<i64: 16, 128>}]} {
    %c0 = arith.constant 0 : index
    %c0_0 = arith.constant 0 : index
    %0 = vector.load %arg1[%c0, %c0_0] : memref<16x128xbf16, #tpu.memory_space<vmem>>, vector<16x128xbf16>
    %c0_1 = arith.constant 0 : index
    %c0_2 = arith.constant 0 : index
    %1 = vector.load %arg2[%c0_1, %c0_2] : memref<128x512xbf16, #tpu.memory_space<vmem>>, vector<128x512xbf16>
    %cst = arith.constant dense<0.000000e+00> : vector<16x512xf32>
    %2 = tpu.matmul %0, %1, %cst {dimension_numbers = #tpu.dot_dimension_numbers<[1], [0], [0], [1], [0, 0, 1, 1], [], []>} : vector<16x128xbf16>, vector<128x512xbf16>, vector<16x512xf32> -> vector<16x512xf32>
    %c0_3 = arith.constant 0 : index
    %c0_4 = arith.constant 0 : index
    %3 = vector.load %arg3[%c0_3, %c0_4] : memref<1x512xf32, #tpu.memory_space<vmem>>, vector<1x512xf32>
    %4 = vector.broadcast %3 : vector<1x512xf32> to vector<16x512xf32>
    %5 = arith.addf %2, %4 : vector<16x512xf32>
    %cst_5 = arith.constant 0.000000e+00 : f32
    %6 = vector.broadcast %cst_5 : f32 to vector<16x512xf32>
    %7 = arith.maximumf %5, %6 : vector<16x512xf32>
    %8 = arith.truncf %7 : vector<16x512xf32> to vector<16x512xbf16>
    %c0_6 = arith.constant 0 : index
    %c0_7 = arith.constant 0 : index
    %9 = vector.load %arg4[%c0_6, %c0_7] : memref<512x256xbf16, #tpu.memory_space<vmem>>, vector<512x256xbf16>
    %cst_8 = arith.constant dense<0.000000e+00> : vector<16x256xf32>
    %10 = tpu.matmul %8, %9, %cst_8 {dimension_numbers = #tpu.dot_dimension_numbers<[1], [0], [0], [1], [0, 0, 1, 1], [], []>} : vector<16x512xbf16>, vector<512x256xbf16>, vector<16x256xf32> -> vector<16x256xf32>
    %c0_9 = arith.constant 0 : index
    %c0_10 = arith.constant 0 : index
    %11 = vector.load %arg5[%c0_9, %c0_10] : memref<1x256xf32, #tpu.memory_space<vmem>>, vector<1x256xf32>
    %12 = vector.broadcast %11 : vector<1x256xf32> to vector<16x256xf32>
    %13 = arith.addf %10, %12 : vector<16x256xf32>
    %cst_11 = arith.constant 0.000000e+00 : f32
    %14 = vector.broadcast %cst_11 : f32 to vector<16x256xf32>
    %15 = arith.maximumf %13, %14 : vector<16x256xf32>
    %16 = arith.truncf %15 : vector<16x256xf32> to vector<16x256xbf16>
    %c0_12 = arith.constant 0 : index
    %c0_13 = arith.constant 0 : index
    %17 = vector.load %arg6[%c0_12, %c0_13] : memref<256x128xbf16, #tpu.memory_space<vmem>>, vector<256x128xbf16>
    %cst_14 = arith.constant dense<0.000000e+00> : vector<16x128xf32>
    %18 = tpu.matmul %16, %17, %cst_14 {dimension_numbers = #tpu.dot_dimension_numbers<[1], [0], [0], [1], [0, 0, 1, 1], [], []>} : vector<16x256xbf16>, vector<256x128xbf16>, vector<16x128xf32> -> vector<16x128xf32>
    %c0_15 = arith.constant 0 : index
    %c0_16 = arith.constant 0 : index
    %19 = vector.load %arg7[%c0_15, %c0_16] : memref<1x128xf32, #tpu.memory_space<vmem>>, vector<1x128xf32>
    %20 = vector.broadcast %19 : vector<1x128xf32> to vector<16x128xf32>
    %21 = arith.addf %18, %20 : vector<16x128xf32>
    %c0_17 = arith.constant 0 : index
    %c0_18 = arith.constant 0 : index
    %22 = vector.load %arg8[%c0_17, %c0_18] : memref<16x128xf32, #tpu.memory_space<vmem>>, vector<16x128xf32>
    tpu.vector_store %arg8[%c0_17, %c0_18], %21 {strides = array<i32>} : memref<16x128xf32, #tpu.memory_space<vmem>>, vector<16x128xf32>,
    return
  }
  func.func @transform_0(%arg0: i32) -> (i32, i32) {
    %c0_i32 = arith.constant 0 : i32
    %c0_i32_0 = arith.constant 0 : i32
    return %arg0, %c0_i32 : i32, i32
  }
  func.func @transform_1(%arg0: i32) -> (i32, i32) {
    %c0_i32 = arith.constant 0 : i32
    %c0_i32_0 = arith.constant 0 : i32
    %c0_i32_1 = arith.constant 0 : i32
    return %c0_i32, %c0_i32_0 : i32, i32
  }
  func.func @transform_2(%arg0: i32) -> (i32, i32) {
    %c0_i32 = arith.constant 0 : i32
    %c0_i32_0 = arith.constant 0 : i32
    %c0_i32_1 = arith.constant 0 : i32
    return %c0_i32, %c0_i32_0 : i32, i32
  }
  func.func @transform_3(%arg0: i32) -> (i32, i32) {
    %c0_i32 = arith.constant 0 : i32
    %c0_i32_0 = arith.constant 0 : i32
    %c0_i32_1 = arith.constant 0 : i32
    return %c0_i32, %c0_i32_0 : i32, i32
  }
  func.func @transform_4(%arg0: i32) -> (i32, i32) {
    %c0_i32 = arith.constant 0 : i32
    %c0_i32_0 = arith.constant 0 : i32
    %c0_i32_1 = arith.constant 0 : i32
    return %c0_i32, %c0_i32_0 : i32, i32
  }
  func.func @transform_5(%arg0: i32) -> (i32, i32) {
    %c0_i32 = arith.constant 0 : i32
    %c0_i32_0 = arith.constant 0 : i32
    %c0_i32_1 = arith.constant 0 : i32
    return %c0_i32, %c0_i32_0 : i32, i32
  }
  func.func @transform_6(%arg0: i32) -> (i32, i32) {
    %c0_i32 = arith.constant 0 : i32
    %c0_i32_0 = arith.constant 0 : i32
    %c0_i32_1 = arith.constant 0 : i32
    return %c0_i32, %c0_i32_0 : i32, i32
  }
  func.func @transform_7(%arg0: i32) -> (i32, i32) {
    %c0_i32 = arith.constant 0 : i32
    %c0_i32_0 = arith.constant 0 : i32
    return %arg0, %c0_i32 : i32, i32
  }
}

module attributes {stable_mosaic.version = 11 : i64} {
  func.func @_head_kernel(%arg0: i32, %arg1: memref<16x128xbf16, #tpu.memory_space<vmem>>, %arg2: memref<128x512xbf16, #tpu.memory_space<vmem>>, %arg3: memref<1x512xf32, #tpu.memory_space<vmem>>, %arg4: memref<512x256xbf16, #tpu.memory_space<vmem>>, %arg5: memref<1x256xf32, #tpu.memory_space<vmem>>, %arg6: memref<256x128xbf16, #tpu.memory_space<vmem>>, %arg7: memref<1x128xf32, #tpu.memory_space<vmem>>, %arg8: memref<16x128xf32, #tpu.memory_space<vmem>>) attributes {dimension_semantics = [#tpu.dimension_semantics<parallel>], iteration_bounds = array<i64: 1>, scalar_prefetch = 0 : i64, scratch_operands = 0 : i64, tpu.core_type = #tpu.core_type<tc>, window_params = [{transform_indices = @transform_0, window_bounds = array<i64: 16, 128>}, {pipeline_mode = #tpu.pipeline_mode<synchronous>, transform_indices = @transform_1, window_bounds = array<i64: 128, 512>}, {pipeline_mode = #tpu.pipeline_mode<synchronous>, transform_indices = @transform_2, window_bounds = array<i64: 1, 512>}, {pipeline_mode = #tpu.pipeline_mode<synchronous>, transform_indices = @transform_3, window_bounds = array<i64: 512, 256>}, {pipeline_mode = #tpu.pipeline_mode<synchronous>, transform_indices = @transform_4, window_bounds = array<i64: 1, 256>}, {pipeline_mode = #tpu.pipeline_mode<synchronous>, transform_indices = @transform_5, window_bounds = array<i64: 256, 128>}, {pipeline_mode = #tpu.pipeline_mode<synchronous>, transform_indices = @transform_6, window_bounds = array<i64: 1, 128>}, {transform_indices = @transform_7, window_bounds = array<i64: 16, 128>}]} {
    %c0 = arith.constant 0 : index
    %c0_0 = arith.constant 0 : index
    %0 = vector.load %arg1[%c0, %c0_0] : memref<16x128xbf16, #tpu.memory_space<vmem>>, vector<16x128xbf16>
    %c0_1 = arith.constant 0 : index
    %c0_2 = arith.constant 0 : index
    %1 = vector.load %arg2[%c0_1, %c0_2] : memref<128x512xbf16, #tpu.memory_space<vmem>>, vector<128x512xbf16>
    %cst = arith.constant dense<0.000000e+00> : vector<16x512xf32>
    %2 = tpu.matmul %0, %1, %cst {dimension_numbers = #tpu.dot_dimension_numbers<[1], [0], [0], [1], [0, 0, 1, 1], [], []>} : vector<16x128xbf16>, vector<128x512xbf16>, vector<16x512xf32> -> vector<16x512xf32>
    %c0_3 = arith.constant 0 : index
    %c0_4 = arith.constant 0 : index
    %3 = vector.load %arg3[%c0_3, %c0_4] : memref<1x512xf32, #tpu.memory_space<vmem>>, vector<1x512xf32>
    %4 = vector.broadcast %3 : vector<1x512xf32> to vector<16x512xf32>
    %5 = arith.addf %2, %4 : vector<16x512xf32>
    %cst_5 = arith.constant 0.000000e+00 : f32
    %6 = vector.broadcast %cst_5 : f32 to vector<16x512xf32>
    %7 = arith.maximumf %5, %6 : vector<16x512xf32>
    %8 = arith.truncf %7 : vector<16x512xf32> to vector<16x512xbf16>
    %c0_6 = arith.constant 0 : index
    %c0_7 = arith.constant 0 : index
    %9 = vector.load %arg4[%c0_6, %c0_7] : memref<512x256xbf16, #tpu.memory_space<vmem>>, vector<512x256xbf16>
    %cst_8 = arith.constant dense<0.000000e+00> : vector<16x256xf32>
    %10 = tpu.matmul %8, %9, %cst_8 {dimension_numbers = #tpu.dot_dimension_numbers<[1], [0], [0], [1], [0, 0, 1, 1], [], []>} : vector<16x512xbf16>, vector<512x256xbf16>, vector<16x256xf32> -> vector<16x256xf32>
    %c0_9 = arith.constant 0 : index
    %c0_10 = arith.constant 0 : index
    %11 = vector.load %arg5[%c0_9, %c0_10] : memref<1x256xf32, #tpu.memory_space<vmem>>, vector<1x256xf32>
    %12 = vector.broadcast %11 : vector<1x256xf32> to vector<16x256xf32>
    %13 = arith.addf %10, %12 : vector<16x256xf32>
    %cst_11 = arith.constant 0.000000e+00 : f32
    %14 = vector.broadcast %cst_11 : f32 to vector<16x256xf32>
    %15 = arith.maximumf %13, %14 : vector<16x256xf32>
    %16 = arith.truncf %15 : vector<16x256xf32> to vector<16x256xbf16>
    %c0_12 = arith.constant 0 : index
    %c0_13 = arith.constant 0 : index
    %17 = vector.load %arg6[%c0_12, %c0_13] : memref<256x128xbf16, #tpu.memory_space<vmem>>, vector<256x128xbf16>
    %cst_14 = arith.constant dense<0.000000e+00> : vector<16x128xf32>
    %18 = tpu.matmul %16, %17, %cst_14 {dimension_numbers = #tpu.dot_dimension_numbers<[1], [0], [0], [1], [0, 0, 1, 1], [], []>} : vector<16x256xbf16>, vector<256x128xbf16>, vector<16x128xf32> -> vector<16x128xf32>
    %c0_15 = arith.constant 0 : index
    %c0_16 = arith.constant 0 : index
    %19 = vector.load %arg7[%c0_15, %c0_16] : memref<1x128xf32, #tpu.memory_space<vmem>>, vector<1x128xf32>
    %20 = vector.broadcast %19 : vector<1x128xf32> to vector<16x128xf32>
    %21 = arith.addf %18, %20 : vector<16x128xf32>
    %c0_17 = arith.constant 0 : index
    %c0_18 = arith.constant 0 : index
    %22 = vector.load %arg8[%c0_17, %c0_18] : memref<16x128xf32, #tpu.memory_space<vmem>>, vector<16x128xf32>
    tpu.vector_store %arg8[%c0_17, %c0_18], %21 {strides = array<i32>} : memref<16x128xf32, #tpu.memory_space<vmem>>, vector<16x128xf32>,
    return
  }
  func.func @transform_0(%arg0: i32) -> (i32, i32) {
    %c0_i32 = arith.constant 0 : i32
    %c0_i32_0 = arith.constant 0 : i32
    return %arg0, %c0_i32 : i32, i32
  }
  func.func @transform_1(%arg0: i32) -> (i32, i32) {
    %c0_i32 = arith.constant 0 : i32
    %c0_i32_0 = arith.constant 0 : i32
    %c0_i32_1 = arith.constant 0 : i32
    return %c0_i32, %c0_i32_0 : i32, i32
  }
  func.func @transform_2(%arg0: i32) -> (i32, i32) {
    %c0_i32 = arith.constant 0 : i32
    %c0_i32_0 = arith.constant 0 : i32
    %c0_i32_1 = arith.constant 0 : i32
    return %c0_i32, %c0_i32_0 : i32, i32
  }
  func.func @transform_3(%arg0: i32) -> (i32, i32) {
    %c0_i32 = arith.constant 0 : i32
    %c0_i32_0 = arith.constant 0 : i32
    %c0_i32_1 = arith.constant 0 : i32
    return %c0_i32, %c0_i32_0 : i32, i32
  }
  func.func @transform_4(%arg0: i32) -> (i32, i32) {
    %c0_i32 = arith.constant 0 : i32
    %c0_i32_0 = arith.constant 0 : i32
    %c0_i32_1 = arith.constant 0 : i32
    return %c0_i32, %c0_i32_0 : i32, i32
  }
  func.func @transform_5(%arg0: i32) -> (i32, i32) {
    %c0_i32 = arith.constant 0 : i32
    %c0_i32_0 = arith.constant 0 : i32
    %c0_i32_1 = arith.constant 0 : i32
    return %c0_i32, %c0_i32_0 : i32, i32
  }
  func.func @transform_6(%arg0: i32) -> (i32, i32) {
    %c0_i32 = arith.constant 0 : i32
    %c0_i32_0 = arith.constant 0 : i32
    %c0_i32_1 = arith.constant 0 : i32
    return %c0_i32, %c0_i32_0 : i32, i32
  }
  func.func @transform_7(%arg0: i32) -> (i32, i32) {
    %c0_i32 = arith.constant 0 : i32
    %c0_i32_0 = arith.constant 0 : i32
    return %arg0, %c0_i32 : i32, i32
  }
}

</mosaic_0001>

<bundles_post_ra>
// kernel: _forward_impl.1
= control target key start
LH: loop header
LB: loop body
LE: loop exit
PB: predicated region body
PF: predicated region fallthrough
CT: control target
= control target key end

     0   :  { %12 = vsyncpa [#allocation3], 0  ;;  %s1522_s0 = inlined_call_operand.vmem [shape: bf16[16,128], index: 0, kind: input, shape index: {}]   ;;  %s1523_s1 = inlined_call_operand.hbm [shape: bf16[128,512], index: 1, kind: input, shape index: {}]   ;;  %s1524_s2 = inlined_call_operand.vmem [shape: f32[1,512], index: 2, kind: input, shape index: {}]   ;;  %s1525_s3 = inlined_call_operand.hbm [shape: bf16[512,256], index: 3, kind: input, shape index: {}]   ;;  %s1526_s4 = inlined_call_operand.vmem [shape: f32[1,256], index: 4, kind: input, shape index: {}]   ;;  %s1527_s5 = inlined_call_operand.hbm [shape: bf16[256,128], index: 5, kind: input, shape index: {}]   ;;  %s1528_s6 = inlined_call_operand.vmem [shape: f32[1,128], index: 6, kind: input, shape index: {}]   ;;  %s1529_s7 = inlined_call_operand.vmem [shape: f32[16,128], index: 7, kind: output, shape index: {}]  }
   0x1   :  { %13 = vsyncpa [#allocation5], 0  ;;  %s1431_s24 = smov [#allocation4]  }
   0x2   :  { %s35_s25 = sshll.u32 %s1431_s24, 4  ;;  %s36_s25 = int_to_ptr.vmem [resolvable:$true] %s35_s25 }
   0x3   :  { %s1375_s26 = scalar_lea.vmem %s36_s25, 8192  ;;  %p1380_p1 = scmp.lt.s32.totalorder %s36_s25, %s36_s25 }
   0x4   :  { %p1376_p0 = scmp.ne.s32.totalorder %s36_s25, %s1375_s26  ;;  %p1381_p2 = scmp.lt.s32.totalorder %s1375_s26, %s1375_s26 }
   0x6   :  { %p1382_p3 = por %p1381_p2, %p1380_p1 }
   0x8   :  { %p1383_p4 = pnand %p1382_p3, %p1376_p0 }
   0xa   :  { %1386 = shalt.err (!%p1383_p4)
}
   0xb   :  { %s1432_s27 = smov 128   ;;  %s1433_s28 = smov 8  }
   0xc   :  { %41 = dma.hbm_to_vmem [thread:$0]  %s1525_s3, 8192, %s36_s25, [#allocation5], %s1432_s27, %s1432_s27, %s1433_s28  }
   0xd   :  { %s1434_s8 = smov [#allocation2]  }
   0xe   :  { %s21_s9 = sshll.u32 %s1434_s8, 4  ;;  %s22_s9 = int_to_ptr.vmem [resolvable:$true] %s21_s9 }
   0xf   :  { %s1395_s10 = scalar_lea.vmem %s22_s9, 4096  ;;  %p1400_p6 = scmp.lt.s32.totalorder %s22_s9, %s22_s9 }
  0x10   :  { %p1396_p5 = scmp.ne.s32.totalorder %s22_s9, %s1395_s10  ;;  %p1401_p7 = scmp.lt.s32.totalorder %s1395_s10, %s1395_s10 }
  0x12   :  { %p1402_p8 = por %p1401_p7, %p1400_p6 }
  0x14   :  { %p1403_p9 = pnand %p1402_p8, %p1396_p5 }
  0x16   :  { %1406 = shalt.err (!%p1403_p9)
}
  0x17   :  { %s1435_s11 = smov 256   ;;  %s1436_s12 = smov 16  }
  0x18   :  { %27 = dma.hbm_to_vmem [thread:$0]  %s1523_s1, 4096, %s22_s9, [#allocation3], %s1435_s11, %s1435_s11, %s1436_s12  }
  0x19   :  { %s1437_s15 = smov [#allocation6]  }
  0x1a   :  { %s49_s16 = sshll.u32 %s1437_s15, 4  ;;  %s50_s16 = int_to_ptr.vmem [resolvable:$true] %s49_s16 }
  0x1b   :  { %s1415_s3 = scalar_lea.vmem %s50_s16, 2048  ;;  %p1420_p11 = scmp.lt.s32.totalorder %s50_s16, %s50_s16 }
  0x1c   :  { %p1416_p10 = scmp.ne.s32.totalorder %s50_s16, %s1415_s3  ;;  %p1421_p12 = scmp.lt.s32.totalorder %s1415_s3, %s1415_s3 }
  0x1e   :  { %p1422_p13 = por %p1421_p12, %p1420_p11 }
  0x20   :  { %p1423_p0 = pnand %p1422_p13, %p1416_p10 }
  0x22   :  { %1426 = shalt.err (!%p1423_p0)
}
  0x23   :  { %s1438_s17 = smov 64   ;;  %s1439_s18 = smov 4  }
  0x24   :  { %55 = dma.hbm_to_vmem [thread:$0]  %s1527_s5, 2048, %s50_s16, [#allocation5], %s1438_s17, %s1438_s17, %s1439_s18  }
  0x25   :  { %1427 = dma.done.wait [#allocation3], 4096  }
  0x26   :  { %1428 = vsyncadd [#allocation3], 4294963200 }
  0x27   :  { %1429 = dma.done.wait [#allocation5], 10240  }
  0x28   :  { %1430 = vsyncadd [#allocation5], 4294957056  ;;  %v1440_v0 = vmov 0   ;;  %v1206_v1 = vld [vmem:[#allocation2 + $0xe4] ss:$16 sps:$4 sm:$0xff]  }
  0x29   :  { %322 = vmatprep.mubr.bf16.mxu0 %v1440_v0  ;;  %365 = vmatprep.mubr.bf16.mxu1 %v1440_v0  ;;  %v1208_v2 = vld [vmem:[#allocation2 + $0xec] ss:$16 sps:$4 sm:$0xff]   ;;  %v1210_v3 = vld [vmem:[#allocation2 + $0xe0] ss:$16 sps:$4 sm:$0xff]   ;;  %v1211_v4 = vld [vmem:[#allocation2 + $0xe8] ss:$16 sps:$4 sm:$0xff]  }
  0x2a   :  { %290 = vmatprep.subr.bf16.mxu0 %v1206_v1  ;;  %333 = vmatprep.subr.bf16.mxu1 %v1208_v2  ;;  %v1212_v5 = vld [vmem:[#allocation2 + $0xc4] ss:$16 sps:$4 sm:$0xff]   ;;  %v1214_v6 = vld [vmem:[#allocation2 + $0xcc] ss:$16 sps:$4 sm:$0xff]   ;;  %v1216_v7 = vld [vmem:[#allocation2 + $0xc0] ss:$16 sps:$4 sm:$0xff]  }
  0x2b   :  { %291 = vmatpush1.bf16.msra.mxu0 %v1210_v3  ;;  %334 = vmatpush1.bf16.msra.mxu1 %v1211_v4  ;;  %v1217_v8 = vld [vmem:[#allocation2 + $0xc8] ss:$16 sps:$4 sm:$0xff]   ;;  %v1218_v9 = vld [vmem:[#allocation2 + $0xa4] ss:$16 sps:$4 sm:$0xff]   ;;  %v1220_v10 = vld [vmem:[#allocation2 + $0xac] ss:$16 sps:$4 sm:$0xff]  }
  0x2c   :  { %292 = vmatprep.subr.bf16.mxu0 %v1212_v5  ;;  %335 = vmatprep.subr.bf16.mxu1 %v1214_v6  ;;  %v1222_v11 = vld [vmem:[#allocation2 + $0xa0] ss:$16 sps:$4 sm:$0xff]   ;;  %v1223_v12 = vld [vmem:[#allocation2 + $0xa8] ss:$16 sps:$4 sm:$0xff]   ;;  %v1224_v13 = vld [vmem:[#allocation2 + $0x84] ss:$16 sps:$4 sm:$0xff]  }
  0x2d   :  { %v1226_v14 = vld [vmem:[#allocation2 + $0x8c] ss:$16 sps:$4 sm:$0xff]   ;;  %v1228_v15 = vld [vmem:[#allocation2 + $0x80] ss:$16 sps:$4 sm:$0xff]   ;;  %v1229_v16 = vld [vmem:[#allocation2 + $0x88] ss:$16 sps:$4 sm:$0xff]  }
  0x2e   :  { %v1230_v17 = vld [vmem:[#allocation2 + $0x64] ss:$16 sps:$4 sm:$0xff]   ;;  %v1232_v18 = vld [vmem:[#allocation2 + $0x6c] ss:$16 sps:$4 sm:$0xff]   ;;  %v1234_v19 = vld [vmem:[#allocation2 + $0x60] ss:$16 sps:$4 sm:$0xff]  }
  0x2f   :  { %293 = vmatpush1.bf16.msra.mxu0 %v1216_v7  ;;  %336 = vmatpush1.bf16.msra.mxu1 %v1217_v8  ;;  %v1235_v20 = vld [vmem:[#allocation2 + $0x68] ss:$16 sps:$4 sm:$0xff]   ;;  %v1236_v21 = vld [vmem:[#allocation2 + $0x44] ss:$16 sps:$4 sm:$0xff]   ;;  %v1238_v22 = vld [vmem:[#allocation2 + $0x4c] ss:$16 sps:$4 sm:$0xff]  }
  0x30   :  { %294 = vmatprep.subr.bf16.mxu0 %v1218_v9  ;;  %337 = vmatprep.subr.bf16.mxu1 %v1220_v10  ;;  %v1240_v23 = vld [vmem:[#allocation2 + $0x40] ss:$16 sps:$4 sm:$0xff]   ;;  %v1241_v24 = vld [vmem:[#allocation2 + $0x48] ss:$16 sps:$4 sm:$0xff]   ;;  %v1242_v25 = vld [vmem:[#allocation2 + $0x24] ss:$16 sps:$4 sm:$0xff]  }
  0x31   :  { %v1244_v26 = vld [vmem:[#allocation2 + $0x2c] ss:$16 sps:$4 sm:$0xff]   ;;  %v1246_v27 = vld [vmem:[#allocation2 + $0x20] ss:$16 sps:$4 sm:$0xff]   ;;  %v1247_v28 = vld [vmem:[#allocation2 + $0x28] ss:$16 sps:$4 sm:$0xff]  }
  0x32   :  { %v1248_v29 = vld [vmem:[#allocation2 + $0x4] ss:$16 sps:$4 sm:$0xff]   ;;  %v1250_v30 = vld [vmem:[#allocation2 + $0xc] ss:$16 sps:$4 sm:$0xff]   ;;  %v1252_v31 = vld [vmem:[#allocation2] ss:$16 sps:$4 sm:$0xff]  }
  0x33   :  { %295 = vmatpush1.bf16.msra.mxu0 %v1222_v11  ;;  %338 = vmatpush1.bf16.msra.mxu1 %v1223_v12  ;;  %v1253_v32 = vld [vmem:[#allocation2 + $0x8] ss:$16 sps:$4 sm:$0xff]   ;;  %v1257_v33 = vld [vmem:[#allocation4 + $0x74] ss:$8 sps:$4 sm:$0xff]   ;;  %v1254_v35 = vld [vmem:[%s1522_s0] sm:$0xff]  }
  0x34   :  { %296 = vmatprep.subr.bf16.mxu0 %v1224_v13  ;;  %339 = vmatprep.subr.bf16.mxu1 %v1226_v14  ;;  %v1260_v34 = vld [vmem:[#allocation4 + $0x174] ss:$8 sps:$4 sm:$0xff]   ;;  %v1255_v36 = vld [vmem:[#allocation4 + $0x70] ss:$8 sps:$4 sm:$0xff]   ;;  %v1263_v38 = vld [vmem:[#allocation4 + $0x64] ss:$8 sps:$4 sm:$0xff]  }
  0x35   :  { %v1258_v37 = vld [vmem:[#allocation4 + $0x170] ss:$8 sps:$4 sm:$0xff]   ;;  %v1266_v39 = vld [vmem:[#allocation4 + $0x164] ss:$8 sps:$4 sm:$0xff]   ;;  %v1261_v40 = vld [vmem:[#allocation4 + $0x60] ss:$8 sps:$4 sm:$0xff]  }
  0x36   :  { %v1264_v41 = vld [vmem:[#allocation4 + $0x160] ss:$8 sps:$4 sm:$0xff]   ;;  %v1269_v42 = vld [vmem:[#allocation4 + $0x54] ss:$8 sps:$4 sm:$0xff]   ;;  %v1267_v44 = vld [vmem:[#allocation4 + $0x50] ss:$8 sps:$4 sm:$0xff]  }
  0x37   :  { %297 = vmatpush1.bf16.msra.mxu0 %v1228_v15  ;;  %340 = vmatpush1.bf16.msra.mxu1 %v1229_v16  ;;  %v1272_v43 = vld [vmem:[#allocation4 + $0x154] ss:$8 sps:$4 sm:$0xff]   ;;  %v1270_v45 = vld [vmem:[#allocation4 + $0x150] ss:$8 sps:$4 sm:$0xff]   ;;  %v1275_v46 = vld [vmem:[#allocation4 + $0x44] ss:$8 sps:$4 sm:$0xff]  }
  0x38   :  { %298 = vmatprep.subr.bf16.mxu0 %v1230_v17  ;;  %341 = vmatprep.subr.bf16.mxu1 %v1232_v18  ;;  %v1278_v47 = vld [vmem:[#allocation4 + $0x144] ss:$8 sps:$4 sm:$0xff]   ;;  %v1273_v48 = vld [vmem:[#allocation4 + $0x40] ss:$8 sps:$4 sm:$0xff]   ;;  %v1281_v50 = vld [vmem:[#allocation4 + $0x34] ss:$8 sps:$4 sm:$0xff]  }
  0x39   :  { %v1276_v49 = vld [vmem:[#allocation4 + $0x140] ss:$8 sps:$4 sm:$0xff]   ;;  %v1284_v51 = vld [vmem:[#allocation4 + $0x134] ss:$8 sps:$4 sm:$0xff]   ;;  %v1279_v52 = vld [vmem:[#allocation4 + $0x30] ss:$8 sps:$4 sm:$0xff]  }
  0x3a   :  { %v1282_v53 = vld [vmem:[#allocation4 + $0x130] ss:$8 sps:$4 sm:$0xff]   ;;  %v1287_v54 = vld [vmem:[#allocation4 + $0x24] ss:$8 sps:$4 sm:$0xff]   ;;  %v1285_v56 = vld [vmem:[#allocation4 + $0x20] ss:$8 sps:$4 sm:$0xff]  }
  0x3b   :  { %299 = vmatpush1.bf16.msra.mxu0 %v1234_v19  ;;  %342 = vmatpush1.bf16.msra.mxu1 %v1235_v20  ;;  %v1290_v55 = vld [vmem:[#allocation4 + $0x124] ss:$8 sps:$4 sm:$0xff]   ;;  %v1288_v57 = vld [vmem:[#allocation4 + $0x120] ss:$8 sps:$4 sm:$0xff]   ;;  %v1293_v58 = vld [vmem:[#allocation4 + $0x14] ss:$8 sps:$4 sm:$0xff]  }
  0x3c   :  { %300 = vmatprep.subr.bf16.mxu0 %v1236_v21  ;;  %343 = vmatprep.subr.bf16.mxu1 %v1238_v22  ;;  %v1296_v59 = vld [vmem:[#allocation4 + $0x114] ss:$8 sps:$4 sm:$0xff]   ;;  %v1291_v60 = vld [vmem:[#allocation4 + $0x10] ss:$8 sps:$4 sm:$0xff]   ;;  %v1299_v62 = vld [vmem:[#allocation4 + $0x4] ss:$8 sps:$4 sm:$0xff]  }
  0x3d   :  { %v1294_v61 = vld [vmem:[#allocation4 + $0x110] ss:$8 sps:$4 sm:$0xff]   ;;  %v1302_v63 = vld [vmem:[#allocation4 + $0x104] ss:$8 sps:$4 sm:$0xff]   ;;  %v1297_v0 = vld [vmem:[#allocation4] ss:$8 sps:$4 sm:$0xff]  }
  0x3e   :  { %v1300_v1 = vld [vmem:[#allocation4 + $0x100] ss:$8 sps:$4 sm:$0xff]   ;;  %v1305_v2 = vld [vmem:[#allocation4 + $0xf4] ss:$8 sps:$4 sm:$0xff]   ;;  %v1303_v4 = vld [vmem:[#allocation4 + $0xf0] ss:$8 sps:$4 sm:$0xff]  }
  0x3f   :  { %301 = vmatpush1.bf16.msra.mxu0 %v1240_v23  ;;  %344 = vmatpush1.bf16.msra.mxu1 %v1241_v24  ;;  %v1308_v3 = vld [vmem:[#allocation4 + $0x1f4] ss:$8 sps:$4 sm:$0xff]   ;;  %v1306_v5 = vld [vmem:[#allocation4 + $0x1f0] ss:$8 sps:$4 sm:$0xff]   ;;  %v1311_v6 = vld [vmem:[#allocation4 + $0xe4] ss:$8 sps:$4 sm:$0xff]  }
  0x40   :  { %302 = vmatprep.subr.bf16.mxu0 %v1242_v25  ;;  %345 = vmatprep.subr.bf16.mxu1 %v1244_v26  ;;  %v1314_v7 = vld [vmem:[#allocation4 + $0x1e4] ss:$8 sps:$4 sm:$0xff]   ;;  %v1309_v8 = vld [vmem:[#allocation4 + $0xe0] ss:$8 sps:$4 sm:$0xff]   ;;  %v1317_v10 = vld [vmem:[#allocation4 + $0xd4] ss:$8 sps:$4 sm:$0xff]  }
  0x41   :  { %v1312_v9 = vld [vmem:[#allocation4 + $0x1e0] ss:$8 sps:$4 sm:$0xff]   ;;  %v1320_v11 = vld [vmem:[#allocation4 + $0x1d4] ss:$8 sps:$4 sm:$0xff]   ;;  %v1315_v12 = vld [vmem:[#allocation4 + $0xd0] ss:$8 sps:$4 sm:$0xff]  }
  0x42   :  { %v1318_v13 = vld [vmem:[#allocation4 + $0x1d0] ss:$8 sps:$4 sm:$0xff]   ;;  %v1323_v14 = vld [vmem:[#allocation4 + $0xc4] ss:$8 sps:$4 sm:$0xff]   ;;  %v1321_v16 = vld [vmem:[#allocation4 + $0xc0] ss:$8 sps:$4 sm:$0xff]  }
  0x43   :  { %303 = vmatpush1.bf16.msra.mxu0 %v1246_v27  ;;  %346 = vmatpush1.bf16.msra.mxu1 %v1247_v28  ;;  %v1326_v15 = vld [vmem:[#allocation4 + $0x1c4] ss:$8 sps:$4 sm:$0xff]   ;;  %v1324_v17 = vld [vmem:[#allocation4 + $0x1c0] ss:$8 sps:$4 sm:$0xff]   ;;  %v1329_v18 = vld [vmem:[#allocation4 + $0xb4] ss:$8 sps:$4 sm:$0xff]  }
  0x44   :  { %304 = vmatprep.subr.bf16.mxu0 %v1248_v29  ;;  %347 = vmatprep.subr.bf16.mxu1 %v1250_v30  ;;  %v1332_v19 = vld [vmem:[#allocation4 + $0x1b4] ss:$8 sps:$4 sm:$0xff]   ;;  %v1327_v20 = vld [vmem:[#allocation4 + $0xb0] ss:$8 sps:$4 sm:$0xff]   ;;  %v1335_v22 = vld [vmem:[#allocation4 + $0xa4] ss:$8 sps:$4 sm:$0xff]  }
  0x45   :  { %v1330_v21 = vld [vmem:[#allocation4 + $0x1b0] ss:$8 sps:$4 sm:$0xff]   ;;  %v1338_v23 = vld [vmem:[#allocation4 + $0x1a4] ss:$8 sps:$4 sm:$0xff]   ;;  %v1333_v24 = vld [vmem:[#allocation4 + $0xa0] ss:$8 sps:$4 sm:$0xff]  }
  0x46   :  { %v1336_v25 = vld [vmem:[#allocation4 + $0x1a0] ss:$8 sps:$4 sm:$0xff]   ;;  %v1341_v26 = vld [vmem:[#allocation4 + $0x94] ss:$8 sps:$4 sm:$0xff]   ;;  %v1339_v28 = vld [vmem:[#allocation4 + $0x90] ss:$8 sps:$4 sm:$0xff]  }
  0x47   :  { %305 = vmatpush1.bf16.msra.mxu0 %v1252_v31  ;;  %348 = vmatpush1.bf16.msra.mxu1 %v1253_v32  ;;  %v1344_v27 = vld [vmem:[#allocation4 + $0x194] ss:$8 sps:$4 sm:$0xff]   ;;  %v1342_v29 = vld [vmem:[#allocation4 + $0x190] ss:$8 sps:$4 sm:$0xff]   ;;  %v1347_v30 = vld [vmem:[#allocation4 + $0x84] ss:$8 sps:$4 sm:$0xff]  }
  0x48   :  { %784 = vmatprep.subr.bf16.mxu0 %v1257_v33  ;;  %827 = vmatprep.subr.bf16.mxu1 %v1260_v34  ;;  %v1350_v31 = vld [vmem:[#allocation4 + $0x184] ss:$8 sps:$4 sm:$0xff]   ;;  %v1345_v32 = vld [vmem:[#allocation4 + $0x80] ss:$8 sps:$4 sm:$0xff]   ;;  %v1351_v34 = vld [vmem:[#allocation6 + $0x78] sm:$0xff]  }
  0x49   :  { %v1348_v33 = vld [vmem:[#allocation4 + $0x180] ss:$8 sps:$4 sm:$0xff]  }
  0x4a   :  { %323 = vmatmul.mubr.bf16.vlgmr.msra.gmra.mxu0 %v1254_v35  ;;  %366 = vmatmul.mubr.bf16.vlgmr.msra.gmra.mxu1 %v1254_v35  ;;  %v104_v35 = vlaneseq }
  0x4b   :  { %785 = vmatpush1.bf16.msra.mxu0 %v1255_v36  ;;  %828 = vmatpush1.bf16.msra.mxu1 %v1258_v37 }
  0x4c   :  { %786 = vmatprep.subr.bf16.mxu0 %v1263_v38  ;;  %829 = vmatprep.subr.bf16.mxu1 %v1266_v39  ;;  %v1493_v36 = vshrl.u32 %v104_v35, 7 }
  0x4e   :  { %v110_v37 = vsub.s32 1, %v1493_v36  ;;  %v118_v38 = vsub.s32 3, %v1493_v36  ;;  %v106_v39 = vsub.s32 0, %v1493_v36 }
  0x4f   :  { %787 = vmatpush1.bf16.msra.mxu0 %v1261_v40  ;;  %830 = vmatpush1.bf16.msra.mxu1 %v1264_v41  ;;  %v114_v40 = vsub.s32 2, %v1493_v36  ;;  %v102_v41 = vld [vmem:[%s1524_s2] sm:$0xf] }
  0x50   :  { %788 = vmatprep.subr.bf16.mxu0 %v1269_v42  ;;  %831 = vmatprep.subr.bf16.mxu1 %v1272_v43 }
  0x53   :  { %789 = vmatpush1.bf16.msra.mxu0 %v1267_v44  ;;  %832 = vmatpush1.bf16.msra.mxu1 %v1270_v45  ;;  %v111_v44 = vrot.slane %v102_v41, %v110_v37  ;;  %v119_v45 = vrot.slane %v102_v41, %v118_v38 }
  0x54   :  { %790 = vmatprep.subr.bf16.mxu0 %v1275_v46  ;;  %833 = vmatprep.subr.bf16.mxu1 %v1278_v47  ;;  %v107_v46 = vrot.slane %v102_v41, %v106_v39  ;;  %v115_v47 = vrot.slane %v102_v41, %v114_v40 }
  0x57   :  { %791 = vmatpush1.bf16.msra.mxu0 %v1273_v48  ;;  %834 = vmatpush1.bf16.msra.mxu1 %v1276_v49 }
  0x58   :  { %792 = vmatprep.subr.bf16.mxu0 %v1281_v50  ;;  %835 = vmatprep.subr.bf16.mxu1 %v1284_v51 }
  0x5b   :  { %793 = vmatpush1.bf16.msra.mxu0 %v1279_v52  ;;  %836 = vmatpush1.bf16.msra.mxu1 %v1282_v53 }
  0x5c   :  { %794 = vmatprep.subr.bf16.mxu0 %v1287_v54  ;;  %837 = vmatprep.subr.bf16.mxu1 %v1290_v55 }
  0x5f   :  { %795 = vmatpush1.bf16.msra.mxu0 %v1285_v56  ;;  %838 = vmatpush1.bf16.msra.mxu1 %v1288_v57 }
  0x60   :  { %796 = vmatprep.subr.bf16.mxu0 %v1293_v58  ;;  %839 = vmatprep.subr.bf16.mxu1 %v1296_v59 }
  0x63   :  { %797 = vmatpush1.bf16.msra.mxu0 %v1291_v60  ;;  %840 = vmatpush1.bf16.msra.mxu1 %v1294_v61 }
  0x64   :  { %798 = vmatprep.subr.bf16.mxu0 %v1299_v62  ;;  %841 = vmatprep.subr.bf16.mxu1 %v1302_v63 }
  0x67   :  { %799 = vmatpush1.bf16.msra.mxu0 %v1297_v0  ;;  %842 = vmatpush1.bf16.msra.mxu1 %v1300_v1 }
  0x68   :  { %800 = vmatprep.subr.bf16.mxu0 %v1305_v2  ;;  %843 = vmatprep.subr.bf16.mxu1 %v1308_v3 }
  0x6b   :  { %801 = vmatpush2.bf16.msra.mxu0 %v1303_v4  ;;  %844 = vmatpush2.bf16.msra.mxu1 %v1306_v5 }
  0x6c   :  { %802 = vmatprep.subr.bf16.mxu0 %v1311_v6  ;;  %845 = vmatprep.subr.bf16.mxu1 %v1314_v7 }
  0x6f   :  { %803 = vmatpush2.bf16.msra.mxu0 %v1309_v8  ;;  %846 = vmatpush2.bf16.msra.mxu1 %v1312_v9  ;;  %v1352_v8 = vld [vmem:[#allocation6 + $0x38] sm:$0xff]  }
  0x70   :  { %804 = vmatprep.subr.bf16.mxu0 %v1317_v10  ;;  %847 = vmatprep.subr.bf16.mxu1 %v1320_v11  ;;  %v1353_v11 = vld [vmem:[#allocation6 + $0x70] sm:$0xff]  }
  0x73   :  { %805 = vmatpush2.bf16.msra.mxu0 %v1315_v12  ;;  %848 = vmatpush2.bf16.msra.mxu1 %v1318_v13  ;;  %v1354_v12 = vld [vmem:[#allocation6 + $0x30] sm:$0xff]   ;;  %v1355_v13 = vld [vmem:[#allocation6 + $0x68] sm:$0xff]  }
  0x74   :  { %806 = vmatprep.subr.bf16.mxu0 %v1323_v14  ;;  %849 = vmatprep.subr.bf16.mxu1 %v1326_v15  ;;  %v1356_v14 = vld [vmem:[#allocation6 + $0x28] sm:$0xff]   ;;  %v1357_v15 = vld [vmem:[#allocation6 + $0x60] sm:$0xff]  }
  0x77   :  { %807 = vmatpush2.bf16.msra.mxu0 %v1321_v16  ;;  %850 = vmatpush2.bf16.msra.mxu1 %v1324_v17  ;;  %v1358_v16 = vld [vmem:[#allocation6 + $0x20] sm:$0xff]   ;;  %v1359_v17 = vld [vmem:[#allocation6 + $0x58] sm:$0xff]  }
  0x78   :  { %808 = vmatprep.subr.bf16.mxu0 %v1329_v18  ;;  %851 = vmatprep.subr.bf16.mxu1 %v1332_v19  ;;  %v1360_v18 = vld [vmem:[#allocation6 + $0x18] sm:$0xff]   ;;  %v1361_v19 = vld [vmem:[#allocation6 + $0x50] sm:$0xff]  }
  0x7b   :  { %809 = vmatpush2.bf16.msra.mxu0 %v1327_v20  ;;  %852 = vmatpush2.bf16.msra.mxu1 %v1330_v21  ;;  %v1362_v20 = vld [vmem:[#allocation6 + $0x10] sm:$0xff]   ;;  %v1363_v21 = vld [vmem:[#allocation6 + $0x48] sm:$0xff]  }
  0x7c   :  { %810 = vmatprep.subr.bf16.mxu0 %v1335_v22  ;;  %853 = vmatprep.subr.bf16.mxu1 %v1338_v23  ;;  %v1364_v22 = vld [vmem:[#allocation6 + $0x8] sm:$0xff]   ;;  %v1365_v23 = vld [vmem:[#allocation6 + $0x40] sm:$0xff]  }
  0x7f   :  { %811 = vmatpush2.bf16.msra.mxu0 %v1333_v24  ;;  %854 = vmatpush2.bf16.msra.mxu1 %v1336_v25  ;;  %v1366_v24 = vld [vmem:[#allocation6] sm:$0xff]  }
  0x80   :  { %812 = vmatprep.subr.bf16.mxu0 %v1341_v26  ;;  %855 = vmatprep.subr.bf16.mxu1 %v1344_v27  ;;  %v452_v25 = vld [vmem:[%s1526_s4] sm:$0x3] }
  0x81   :  { %v461_v26 = vrot.slane %v452_v25, %v110_v37  ;;  %v457_v27 = vrot.slane %v452_v25, %v106_v39 }
  0x83   :  { %813 = vmatpush2.bf16.msra.mxu0 %v1339_v28  ;;  %856 = vmatpush2.bf16.msra.mxu1 %v1342_v29 }
  0x84   :  { %814 = vmatprep.subr.bf16.mxu0 %v1347_v30  ;;  %857 = vmatprep.subr.bf16.mxu1 %v1350_v31 }
  0x87   :  { %815 = vmatpush2.bf16.msra.mxu0 %v1345_v32  ;;  %858 = vmatpush2.bf16.msra.mxu1 %v1348_v33 }
  0x88   :  { %1174 = vmatprep.subr.bf16.mxu0 %v1351_v34 }
 0x10a   :  { %v324_v42 = vpop.f32.mrf.mxu0  ;;  %v367_v43 = vpop.f32.mrf.mxu1 }
 0x10b   :  { %v325_v56 = vadd.f32 %v324_v42, %v107_v46  ;;  %v368_v57 = vadd.f32 %v367_v43, %v115_v47 }
 0x10c   :  { %v326_v48 = vpop.f32.mrf.mxu0  ;;  %v369_v49 = vpop.f32.mrf.mxu1 }
 0x10d   :  { %v327_v52 = vadd.f32 %v326_v48, %v111_v44  ;;  %v370_v53 = vadd.f32 %v369_v49, %v119_v45  ;;  %v376_v4 = vmax.f32 %v325_v56, 0.0  ;;  %v378_v5 = vmax.f32 %v368_v57, 0.0 }
 0x10e   :  { %v328_v50 = vpop.f32.mrf.mxu0  ;;  %v371_v51 = vpop.f32.mrf.mxu1 }
 0x10f   :  { %v329_v54 = vadd.f32 %v328_v50, %v107_v46  ;;  %v372_v55 = vadd.f32 %v371_v51, %v115_v47  ;;  %v377_v0 = vmax.f32 %v327_v52, 0.0  ;;  %v379_v1 = vmax.f32 %v370_v53, 0.0  ;;  %v1157_v51 = vld [vmem:[%s1528_s6] ss:$0 sm:$0xff] }
 0x110   :  { %v330_v58 = vpop.f32.mrf.mxu0  ;;  %v373_v59 = vpop.f32.mrf.mxu1 }
 0x111   :  { %v331_v60 = vadd.f32 %v330_v58, %v111_v44  ;;  %v374_v61 = vadd.f32 %v373_v59, %v119_v45  ;;  %v380_v62 = vmax.f32 %v329_v54, 0.0  ;;  %v382_v63 = vmax.f32 %v372_v55, 0.0 }
 0x113   :  { %v381_v2 = vmax.f32 %v331_v60, 0.0  ;;  %v383_v3 = vmax.f32 %v374_v61, 0.0  ;;  %v384_v9 = vpack.c.bf16 %v380_v62, %v376_v4  ;;  %v386_v10 = vpack.c.bf16 %v382_v63, %v378_v5 }
 0x115   :  { %v385_v6 = vpack.c.bf16 %v381_v2, %v377_v0  ;;  %v387_v7 = vpack.c.bf16 %v383_v3, %v379_v1 }
 0x117   :  { %816 = vmatprep.mubr.bf16.mxu0 %v385_v6  ;;  %859 = vmatprep.mubr.bf16.mxu1 %v387_v7 }
 0x118   :  { %817 = vmatmul.mubr.bf16.vlgmr.msra.gmra.mxu0 %v384_v9  ;;  %860 = vmatmul.mubr.bf16.vlgmr.msra.gmra.mxu1 %v386_v10 }
 0x119   :  { %1175 = vmatpush3.bf16.msra.mxu0 %v1352_v8 }
 0x11a   :  { %1176 = vmatprep.subr.bf16.mxu0 %v1353_v11 }
 0x11d   :  { %1177 = vmatpush3.bf16.msra.mxu0 %v1354_v12 }
 0x11e   :  { %1178 = vmatprep.subr.bf16.mxu0 %v1355_v13 }
 0x121   :  { %1179 = vmatpush3.bf16.msra.mxu0 %v1356_v14 }
 0x122   :  { %1180 = vmatprep.subr.bf16.mxu0 %v1357_v15 }
 0x125   :  { %1181 = vmatpush3.bf16.msra.mxu0 %v1358_v16 }
 0x126   :  { %1182 = vmatprep.subr.bf16.mxu0 %v1359_v17 }
 0x129   :  { %1183 = vmatpush3.bf16.msra.mxu0 %v1360_v18 }
 0x12a   :  { %1184 = vmatprep.subr.bf16.mxu0 %v1361_v19 }
 0x12d   :  { %1185 = vmatpush3.bf16.msra.mxu0 %v1362_v20 }
 0x12e   :  { %1186 = vmatprep.subr.bf16.mxu0 %v1363_v21 }
 0x131   :  { %1187 = vmatpush3.bf16.msra.mxu0 %v1364_v22 }
 0x132   :  { %1188 = vmatprep.subr.bf16.mxu0 %v1365_v23 }
 0x135   :  { %1189 = vmatpush3.bf16.msra.mxu0 %v1366_v24 }
 0x1d8   :  { %v818_v28 = vpop.f32.mrf.mxu0  ;;  %v861_v29 = vpop.f32.mrf.mxu1 }
 0x1d9   :  { %v819_v33 = vadd.f32 %v818_v28, %v457_v27 }
 0x1da   :  { %v820_v30 = vpop.f32.mrf.mxu0  ;;  %v863_v31 = vpop.f32.mrf.mxu1 }
 0x1db   :  { %v821_v32 = vadd.f32 %v820_v30, %v461_v26  ;;  %v862_v44 = vadd.f32 %v861_v29, %v819_v33 }
 0x1dc   :  { %v822_v34 = vpop.f32.mrf.mxu0  ;;  %v865_v35 = vpop.f32.mrf.mxu1 }
 0x1dd   :  { %v823_v38 = vadd.f32 %v822_v34, %v457_v27  ;;  %v864_v41 = vadd.f32 %v863_v31, %v821_v32  ;;  %v870_v39 = vmax.f32 %v862_v44, 0.0 }
 0x1de   :  { %v824_v40 = vpop.f32.mrf.mxu0  ;;  %v867_v45 = vpop.f32.mrf.mxu1 }
 0x1df   :  { %v866_v42 = vadd.f32 %v865_v35, %v823_v38  ;;  %v825_v43 = vadd.f32 %v824_v40, %v461_v26  ;;  %v871_v47 = vmax.f32 %v864_v41, 0.0 }
 0x1e1   :  { %v868_v46 = vadd.f32 %v867_v45, %v825_v43  ;;  %v872_v37 = vmax.f32 %v866_v42, 0.0 }
 0x1e3   :  { %v873_v36 = vmax.f32 %v868_v46, 0.0  ;;  %v874_v49 = vpack.c.bf16 %v872_v37, %v870_v39 }
 0x1e5   :  { %v875_v48 = vpack.c.bf16 %v873_v36, %v871_v47 }
 0x1e7   :  { %1043 = vmatprep.mubr.bf16.mxu0 %v875_v48 }
 0x1e8   :  { %1044 = vmatmul.mubr.bf16.vlgmr.msra.gmra.mxu0 %v874_v49 }
 0x2a8   :  { %v1190_v50 = vpop.f32.mrf.mxu0 }
 0x2aa   :  { %v1191_v52 = vpop.f32.mrf.mxu0 }
 0x2ab   :  { %v1192_v53 = vadd.f32 %v1191_v52, %v1190_v50 }
 0x2ac   :  { %v1193_v54 = vpop.f32.mrf.mxu0 }
 0x2ad   :  { %v1046_v55 = vadd.f32 %v1192_v53, %v1157_v51 }
 0x2ae   :  { %v1194_v56 = vpop.f32.mrf.mxu0 }
 0x2af   :  { %1052 = vst [vmem:[%s1529_s7] sm:$0xff] %v1046_v55  ;;  %v1195_v57 = vadd.f32 %v1194_v56, %v1193_v54 }
 0x2b1   :  { %v1049_v58 = vadd.f32 %v1195_v57, %v1157_v51 }
 0x2b3   :  { %1053 = vst [vmem:[%s1529_s7 + $0x8] sm:$0xff] %v1049_v58 }
 0x2b4   :  { %1058 = vsyncpa [#allocation3], 1 }
 0x2b5   :  { %1059 = vsyncpa [#allocation5], 1 }

// kernel: _forward_impl.1
= control target key start
LH: loop header
LB: loop body
LE: loop exit
PB: predicated region body
PF: predicated region fallthrough
CT: control target
= control target key end

     0   :  { %12 = vsyncpa [#allocation3], 0  ;;  %s1522_s0 = inlined_call_operand.vmem [shape: bf16[16,128], index: 0, kind: input, shape index: {}]   ;;  %s1523_s1 = inlined_call_operand.hbm [shape: bf16[128,512], index: 1, kind: input, shape index: {}]   ;;  %s1524_s2 = inlined_call_operand.vmem [shape: f32[1,512], index: 2, kind: input, shape index: {}]   ;;  %s1525_s3 = inlined_call_operand.hbm [shape: bf16[512,256], index: 3, kind: input, shape index: {}]   ;;  %s1526_s4 = inlined_call_operand.vmem [shape: f32[1,256], index: 4, kind: input, shape index: {}]   ;;  %s1527_s5 = inlined_call_operand.hbm [shape: bf16[256,128], index: 5, kind: input, shape index: {}]   ;;  %s1528_s6 = inlined_call_operand.vmem [shape: f32[1,128], index: 6, kind: input, shape index: {}]   ;;  %s1529_s7 = inlined_call_operand.vmem [shape: f32[16,128], index: 7, kind: output, shape index: {}]  }
   0x1   :  { %13 = vsyncpa [#allocation5], 0  ;;  %s1431_s24 = smov [#allocation4]  }
   0x2   :  { %s35_s25 = sshll.u32 %s1431_s24, 4  ;;  %s36_s25 = int_to_ptr.vmem [resolvable:$true] %s35_s25 }
   0x3   :  { %s1375_s26 = scalar_lea.vmem %s36_s25, 8192  ;;  %p1380_p1 = scmp.lt.s32.totalorder %s36_s25, %s36_s25 }
   0x4   :  { %p1376_p0 = scmp.ne.s32.totalorder %s36_s25, %s1375_s26  ;;  %p1381_p2 = scmp.lt.s32.totalorder %s1375_s26, %s1375_s26 }
   0x6   :  { %p1382_p3 = por %p1381_p2, %p1380_p1 }
   0x8   :  { %p1383_p4 = pnand %p1382_p3, %p1376_p0 }
   0xa   :  { %1386 = shalt.err (!%p1383_p4)
}
   0xb   :  { %s1432_s27 = smov 128   ;;  %s1433_s28 = smov 8  }
   0xc   :  { %41 = dma.hbm_to_vmem [thread:$0]  %s1525_s3, 8192, %s36_s25, [#allocation5], %s1432_s27, %s1432_s27, %s1433_s28  }
   0xd   :  { %s1434_s8 = smov [#allocation2]  }
   0xe   :  { %s21_s9 = sshll.u32 %s1434_s8, 4  ;;  %s22_s9 = int_to_ptr.vmem [resolvable:$true] %s21_s9 }
   0xf   :  { %s1395_s10 = scalar_lea.vmem %s22_s9, 4096  ;;  %p1400_p6 = scmp.lt.s32.totalorder %s22_s9, %s22_s9 }
  0x10   :  { %p1396_p5 = scmp.ne.s32.totalorder %s22_s9, %s1395_s10  ;;  %p1401_p7 = scmp.lt.s32.totalorder %s1395_s10, %s1395_s10 }
  0x12   :  { %p1402_p8 = por %p1401_p7, %p1400_p6 }
  0x14   :  { %p1403_p9 = pnand %p1402_p8, %p1396_p5 }
  0x16   :  { %1406 = shalt.err (!%p1403_p9)
}
  0x17   :  { %s1435_s11 = smov 256   ;;  %s1436_s12 = smov 16  }
  0x18   :  { %27 = dma.hbm_to_vmem [thread:$0]  %s1523_s1, 4096, %s22_s9, [#allocation3], %s1435_s11, %s1435_s11, %s1436_s12  }
  0x19   :  { %s1437_s15 = smov [#allocation6]  }
  0x1a   :  { %s49_s16 = sshll.u32 %s1437_s15, 4  ;;  %s50_s16 = int_to_ptr.vmem [resolvable:$true] %s49_s16 }
  0x1b   :  { %s1415_s3 = scalar_lea.vmem %s50_s16, 2048  ;;  %p1420_p11 = scmp.lt.s32.totalorder %s50_s16, %s50_s16 }
  0x1c   :  { %p1416_p10 = scmp.ne.s32.totalorder %s50_s16, %s1415_s3  ;;  %p1421_p12 = scmp.lt.s32.totalorder %s1415_s3, %s1415_s3 }
  0x1e   :  { %p1422_p13 = por %p1421_p12, %p1420_p11 }
  0x20   :  { %p1423_p0 = pnand %p1422_p13, %p1416_p10 }
  0x22   :  { %1426 = shalt.err (!%p1423_p0)
}
  0x23   :  { %s1438_s17 = smov 64   ;;  %s1439_s18 = smov 4  }
  0x24   :  { %55 = dma.hbm_to_vmem [thread:$0]  %s1527_s5, 2048, %s50_s16, [#allocation5], %s1438_s17, %s1438_s17, %s1439_s18  }
  0x25   :  { %1427 = dma.done.wait [#allocation3], 4096  }
  0x26   :  { %1428 = vsyncadd [#allocation3], 4294963200 }
  0x27   :  { %1429 = dma.done.wait [#allocation5], 10240  }
  0x28   :  { %1430 = vsyncadd [#allocation5], 4294957056  ;;  %v1440_v0 = vmov 0   ;;  %v1206_v1 = vld [vmem:[#allocation2 + $0xe4] ss:$16 sps:$4 sm:$0xff]  }
  0x29   :  { %322 = vmatprep.mubr.bf16.mxu0 %v1440_v0  ;;  %365 = vmatprep.mubr.bf16.mxu1 %v1440_v0  ;;  %v1208_v2 = vld [vmem:[#allocation2 + $0xec] ss:$16 sps:$4 sm:$0xff]   ;;  %v1210_v3 = vld [vmem:[#allocation2 + $0xe0] ss:$16 sps:$4 sm:$0xff]   ;;  %v1211_v4 = vld [vmem:[#allocation2 + $0xe8] ss:$16 sps:$4 sm:$0xff]  }
  0x2a   :  { %290 = vmatprep.subr.bf16.mxu0 %v1206_v1  ;;  %333 = vmatprep.subr.bf16.mxu1 %v1208_v2  ;;  %v1212_v5 = vld [vmem:[#allocation2 + $0xc4] ss:$16 sps:$4 sm:$0xff]   ;;  %v1214_v6 = vld [vmem:[#allocation2 + $0xcc] ss:$16 sps:$4 sm:$0xff]   ;;  %v1216_v7 = vld [vmem:[#allocation2 + $0xc0] ss:$16 sps:$4 sm:$0xff]  }
  0x2b   :  { %291 = vmatpush1.bf16.msra.mxu0 %v1210_v3  ;;  %334 = vmatpush1.bf16.msra.mxu1 %v1211_v4  ;;  %v1217_v8 = vld [vmem:[#allocation2 + $0xc8] ss:$16 sps:$4 sm:$0xff]   ;;  %v1218_v9 = vld [vmem:[#allocation2 + $0xa4] ss:$16 sps:$4 sm:$0xff]   ;;  %v1220_v10 = vld [vmem:[#allocation2 + $0xac] ss:$16 sps:$4 sm:$0xff]  }
  0x2c   :  { %292 = vmatprep.subr.bf16.mxu0 %v1212_v5  ;;  %335 = vmatprep.subr.bf16.mxu1 %v1214_v6  ;;  %v1222_v11 = vld [vmem:[#allocation2 + $0xa0] ss:$16 sps:$4 sm:$0xff]   ;;  %v1223_v12 = vld [vmem:[#allocation2 + $0xa8] ss:$16 sps:$4 sm:$0xff]   ;;  %v1224_v13 = vld [vmem:[#allocation2 + $0x84] ss:$16 sps:$4 sm:$0xff]  }
  0x2d   :  { %v1226_v14 = vld [vmem:[#allocation2 + $0x8c] ss:$16 sps:$4 sm:$0xff]   ;;  %v1228_v15 = vld [vmem:[#allocation2 + $0x80] ss:$16 sps:$4 sm:$0xff]   ;;  %v1229_v16 = vld [vmem:[#allocation2 + $0x88] ss:$16 sps:$4 sm:$0xff]  }
  0x2e   :  { %v1230_v17 = vld [vmem:[#allocation2 + $0x64] ss:$16 sps:$4 sm:$0xff]   ;;  %v1232_v18 = vld [vmem:[#allocation2 + $0x6c] ss:$16 sps:$4 sm:$0xff]   ;;  %v1234_v19 = vld [vmem:[#allocation2 + $0x60] ss:$16 sps:$4 sm:$0xff]  }
  0x2f   :  { %293 = vmatpush1.bf16.msra.mxu0 %v1216_v7  ;;  %336 = vmatpush1.bf16.msra.mxu1 %v1217_v8  ;;  %v1235_v20 = vld [vmem:[#allocation2 + $0x68] ss:$16 sps:$4 sm:$0xff]   ;;  %v1236_v21 = vld [vmem:[#allocation2 + $0x44] ss:$16 sps:$4 sm:$0xff]   ;;  %v1238_v22 = vld [vmem:[#allocation2 + $0x4c] ss:$16 sps:$4 sm:$0xff]  }
  0x30   :  { %294 = vmatprep.subr.bf16.mxu0 %v1218_v9  ;;  %337 = vmatprep.subr.bf16.mxu1 %v1220_v10  ;;  %v1240_v23 = vld [vmem:[#allocation2 + $0x40] ss:$16 sps:$4 sm:$0xff]   ;;  %v1241_v24 = vld [vmem:[#allocation2 + $0x48] ss:$16 sps:$4 sm:$0xff]   ;;  %v1242_v25 = vld [vmem:[#allocation2 + $0x24] ss:$16 sps:$4 sm:$0xff]  }
  0x31   :  { %v1244_v26 = vld [vmem:[#allocation2 + $0x2c] ss:$16 sps:$4 sm:$0xff]   ;;  %v1246_v27 = vld [vmem:[#allocation2 + $0x20] ss:$16 sps:$4 sm:$0xff]   ;;  %v1247_v28 = vld [vmem:[#allocation2 + $0x28] ss:$16 sps:$4 sm:$0xff]  }
  0x32   :  { %v1248_v29 = vld [vmem:[#allocation2 + $0x4] ss:$16 sps:$4 sm:$0xff]   ;;  %v1250_v30 = vld [vmem:[#allocation2 + $0xc] ss:$16 sps:$4 sm:$0xff]   ;;  %v1252_v31 = vld [vmem:[#allocation2] ss:$16 sps:$4 sm:$0xff]  }
  0x33   :  { %295 = vmatpush1.bf16.msra.mxu0 %v1222_v11  ;;  %338 = vmatpush1.bf16.msra.mxu1 %v1223_v12  ;;  %v1253_v32 = vld [vmem:[#allocation2 + $0x8] ss:$16 sps:$4 sm:$0xff]   ;;  %v1257_v33 = vld [vmem:[#allocation4 + $0x74] ss:$8 sps:$4 sm:$0xff]   ;;  %v1254_v35 = vld [vmem:[%s1522_s0] sm:$0xff]  }
  0x34   :  { %296 = vmatprep.subr.bf16.mxu0 %v1224_v13  ;;  %339 = vmatprep.subr.bf16.mxu1 %v1226_v14  ;;  %v1260_v34 = vld [vmem:[#allocation4 + $0x174] ss:$8 sps:$4 sm:$0xff]   ;;  %v1255_v36 = vld [vmem:[#allocation4 + $0x70] ss:$8 sps:$4 sm:$0xff]   ;;  %v1263_v38 = vld [vmem:[#allocation4 + $0x64] ss:$8 sps:$4 sm:$0xff]  }
  0x35   :  { %v1258_v37 = vld [vmem:[#allocation4 + $0x170] ss:$8 sps:$4 sm:$0xff]   ;;  %v1266_v39 = vld [vmem:[#allocation4 + $0x164] ss:$8 sps:$4 sm:$0xff]   ;;  %v1261_v40 = vld [vmem:[#allocation4 + $0x60] ss:$8 sps:$4 sm:$0xff]  }
  0x36   :  { %v1264_v41 = vld [vmem:[#allocation4 + $0x160] ss:$8 sps:$4 sm:$0xff]   ;;  %v1269_v42 = vld [vmem:[#allocation4 + $0x54] ss:$8 sps:$4 sm:$0xff]   ;;  %v1267_v44 = vld [vmem:[#allocation4 + $0x50] ss:$8 sps:$4 sm:$0xff]  }
  0x37   :  { %297 = vmatpush1.bf16.msra.mxu0 %v1228_v15  ;;  %340 = vmatpush1.bf16.msra.mxu1 %v1229_v16  ;;  %v1272_v43 = vld [vmem:[#allocation4 + $0x154] ss:$8 sps:$4 sm:$0xff]   ;;  %v1270_v45 = vld [vmem:[#allocation4 + $0x150] ss:$8 sps:$4 sm:$0xff]   ;;  %v1275_v46 = vld [vmem:[#allocation4 + $0x44] ss:$8 sps:$4 sm:$0xff]  }
  0x38   :  { %298 = vmatprep.subr.bf16.mxu0 %v1230_v17  ;;  %341 = vmatprep.subr.bf16.mxu1 %v1232_v18  ;;  %v1278_v47 = vld [vmem:[#allocation4 + $0x144] ss:$8 sps:$4 sm:$0xff]   ;;  %v1273_v48 = vld [vmem:[#allocation4 + $0x40] ss:$8 sps:$4 sm:$0xff]   ;;  %v1281_v50 = vld [vmem:[#allocation4 + $0x34] ss:$8 sps:$4 sm:$0xff]  }
  0x39   :  { %v1276_v49 = vld [vmem:[#allocation4 + $0x140] ss:$8 sps:$4 sm:$0xff]   ;;  %v1284_v51 = vld [vmem:[#allocation4 + $0x134] ss:$8 sps:$4 sm:$0xff]   ;;  %v1279_v52 = vld [vmem:[#allocation4 + $0x30] ss:$8 sps:$4 sm:$0xff]  }
  0x3a   :  { %v1282_v53 = vld [vmem:[#allocation4 + $0x130] ss:$8 sps:$4 sm:$0xff]   ;;  %v1287_v54 = vld [vmem:[#allocation4 + $0x24] ss:$8 sps:$4 sm:$0xff]   ;;  %v1285_v56 = vld [vmem:[#allocation4 + $0x20] ss:$8 sps:$4 sm:$0xff]  }
  0x3b   :  { %299 = vmatpush1.bf16.msra.mxu0 %v1234_v19  ;;  %342 = vmatpush1.bf16.msra.mxu1 %v1235_v20  ;;  %v1290_v55 = vld [vmem:[#allocation4 + $0x124] ss:$8 sps:$4 sm:$0xff]   ;;  %v1288_v57 = vld [vmem:[#allocation4 + $0x120] ss:$8 sps:$4 sm:$0xff]   ;;  %v1293_v58 = vld [vmem:[#allocation4 + $0x14] ss:$8 sps:$4 sm:$0xff]  }
  0x3c   :  { %300 = vmatprep.subr.bf16.mxu0 %v1236_v21  ;;  %343 = vmatprep.subr.bf16.mxu1 %v1238_v22  ;;  %v1296_v59 = vld [vmem:[#allocation4 + $0x114] ss:$8 sps:$4 sm:$0xff]   ;;  %v1291_v60 = vld [vmem:[#allocation4 + $0x10] ss:$8 sps:$4 sm:$0xff]   ;;  %v1299_v62 = vld [vmem:[#allocation4 + $0x4] ss:$8 sps:$4 sm:$0xff]  }
  0x3d   :  { %v1294_v61 = vld [vmem:[#allocation4 + $0x110] ss:$8 sps:$4 sm:$0xff]   ;;  %v1302_v63 = vld [vmem:[#allocation4 + $0x104] ss:$8 sps:$4 sm:$0xff]   ;;  %v1297_v0 = vld [vmem:[#allocation4] ss:$8 sps:$4 sm:$0xff]  }
  0x3e   :  { %v1300_v1 = vld [vmem:[#allocation4 + $0x100] ss:$8 sps:$4 sm:$0xff]   ;;  %v1305_v2 = vld [vmem:[#allocation4 + $0xf4] ss:$8 sps:$4 sm:$0xff]   ;;  %v1303_v4 = vld [vmem:[#allocation4 + $0xf0] ss:$8 sps:$4 sm:$0xff]  }
  0x3f   :  { %301 = vmatpush1.bf16.msra.mxu0 %v1240_v23  ;;  %344 = vmatpush1.bf16.msra.mxu1 %v1241_v24  ;;  %v1308_v3 = vld [vmem:[#allocation4 + $0x1f4] ss:$8 sps:$4 sm:$0xff]   ;;  %v1306_v5 = vld [vmem:[#allocation4 + $0x1f0] ss:$8 sps:$4 sm:$0xff]   ;;  %v1311_v6 = vld [vmem:[#allocation4 + $0xe4] ss:$8 sps:$4 sm:$0xff]  }
  0x40   :  { %302 = vmatprep.subr.bf16.mxu0 %v1242_v25  ;;  %345 = vmatprep.subr.bf16.mxu1 %v1244_v26  ;;  %v1314_v7 = vld [vmem:[#allocation4 + $0x1e4] ss:$8 sps:$4 sm:$0xff]   ;;  %v1309_v8 = vld [vmem:[#allocation4 + $0xe0] ss:$8 sps:$4 sm:$0xff]   ;;  %v1317_v10 = vld [vmem:[#allocation4 + $0xd4] ss:$8 sps:$4 sm:$0xff]  }
  0x41   :  { %v1312_v9 = vld [vmem:[#allocation4 + $0x1e0] ss:$8 sps:$4 sm:$0xff]   ;;  %v1320_v11 = vld [vmem:[#allocation4 + $0x1d4] ss:$8 sps:$4 sm:$0xff]   ;;  %v1315_v12 = vld [vmem:[#allocation4 + $0xd0] ss:$8 sps:$4 sm:$0xff]  }
  0x42   :  { %v1318_v13 = vld [vmem:[#allocation4 + $0x1d0] ss:$8 sps:$4 sm:$0xff]   ;;  %v1323_v14 = vld [vmem:[#allocation4 + $0xc4] ss:$8 sps:$4 sm:$0xff]   ;;  %v1321_v16 = vld [vmem:[#allocation4 + $0xc0] ss:$8 sps:$4 sm:$0xff]  }
  0x43   :  { %303 = vmatpush1.bf16.msra.mxu0 %v1246_v27  ;;  %346 = vmatpush1.bf16.msra.mxu1 %v1247_v28  ;;  %v1326_v15 = vld [vmem:[#allocation4 + $0x1c4] ss:$8 sps:$4 sm:$0xff]   ;;  %v1324_v17 = vld [vmem:[#allocation4 + $0x1c0] ss:$8 sps:$4 sm:$0xff]   ;;  %v1329_v18 = vld [vmem:[#allocation4 + $0xb4] ss:$8 sps:$4 sm:$0xff]  }
  0x44   :  { %304 = vmatprep.subr.bf16.mxu0 %v1248_v29  ;;  %347 = vmatprep.subr.bf16.mxu1 %v1250_v30  ;;  %v1332_v19 = vld [vmem:[#allocation4 + $0x1b4] ss:$8 sps:$4 sm:$0xff]   ;;  %v1327_v20 = vld [vmem:[#allocation4 + $0xb0] ss:$8 sps:$4 sm:$0xff]   ;;  %v1335_v22 = vld [vmem:[#allocation4 + $0xa4] ss:$8 sps:$4 sm:$0xff]  }
  0x45   :  { %v1330_v21 = vld [vmem:[#allocation4 + $0x1b0] ss:$8 sps:$4 sm:$0xff]   ;;  %v1338_v23 = vld [vmem:[#allocation4 + $0x1a4] ss:$8 sps:$4 sm:$0xff]   ;;  %v1333_v24 = vld [vmem:[#allocation4 + $0xa0] ss:$8 sps:$4 sm:$0xff]  }
  0x46   :  { %v1336_v25 = vld [vmem:[#allocation4 + $0x1a0] ss:$8 sps:$4 sm:$0xff]   ;;  %v1341_v26 = vld [vmem:[#allocation4 + $0x94] ss:$8 sps:$4 sm:$0xff]   ;;  %v1339_v28 = vld [vmem:[#allocation4 + $0x90] ss:$8 sps:$4 sm:$0xff]  }
  0x47   :  { %305 = vmatpush1.bf16.msra.mxu0 %v1252_v31  ;;  %348 = vmatpush1.bf16.msra.mxu1 %v1253_v32  ;;  %v1344_v27 = vld [vmem:[#allocation4 + $0x194] ss:$8 sps:$4 sm:$0xff]   ;;  %v1342_v29 = vld [vmem:[#allocation4 + $0x190] ss:$8 sps:$4 sm:$0xff]   ;;  %v1347_v30 = vld [vmem:[#allocation4 + $0x84] ss:$8 sps:$4 sm:$0xff]  }
  0x48   :  { %784 = vmatprep.subr.bf16.mxu0 %v1257_v33  ;;  %827 = vmatprep.subr.bf16.mxu1 %v1260_v34  ;;  %v1350_v31 = vld [vmem:[#allocation4 + $0x184] ss:$8 sps:$4 sm:$0xff]   ;;  %v1345_v32 = vld [vmem:[#allocation4 + $0x80] ss:$8 sps:$4 sm:$0xff]   ;;  %v1351_v34 = vld [vmem:[#allocation6 + $0x78] sm:$0xff]  }
  0x49   :  { %v1348_v33 = vld [vmem:[#allocation4 + $0x180] ss:$8 sps:$4 sm:$0xff]  }
  0x4a   :  { %323 = vmatmul.mubr.bf16.vlgmr.msra.gmra.mxu0 %v1254_v35  ;;  %366 = vmatmul.mubr.bf16.vlgmr.msra.gmra.mxu1 %v1254_v35  ;;  %v104_v35 = vlaneseq }
  0x4b   :  { %785 = vmatpush1.bf16.msra.mxu0 %v1255_v36  ;;  %828 = vmatpush1.bf16.msra.mxu1 %v1258_v37 }
  0x4c   :  { %786 = vmatprep.subr.bf16.mxu0 %v1263_v38  ;;  %829 = vmatprep.subr.bf16.mxu1 %v1266_v39  ;;  %v1493_v36 = vshrl.u32 %v104_v35, 7 }
  0x4e   :  { %v110_v37 = vsub.s32 1, %v1493_v36  ;;  %v118_v38 = vsub.s32 3, %v1493_v36  ;;  %v106_v39 = vsub.s32 0, %v1493_v36 }
  0x4f   :  { %787 = vmatpush1.bf16.msra.mxu0 %v1261_v40  ;;  %830 = vmatpush1.bf16.msra.mxu1 %v1264_v41  ;;  %v114_v40 = vsub.s32 2, %v1493_v36  ;;  %v102_v41 = vld [vmem:[%s1524_s2] sm:$0xf] }
  0x50   :  { %788 = vmatprep.subr.bf16.mxu0 %v1269_v42  ;;  %831 = vmatprep.subr.bf16.mxu1 %v1272_v43 }
  0x53   :  { %789 = vmatpush1.bf16.msra.mxu0 %v1267_v44  ;;  %832 = vmatpush1.bf16.msra.mxu1 %v1270_v45  ;;  %v111_v44 = vrot.slane %v102_v41, %v110_v37  ;;  %v119_v45 = vrot.slane %v102_v41, %v118_v38 }
  0x54   :  { %790 = vmatprep.subr.bf16.mxu0 %v1275_v46  ;;  %833 = vmatprep.subr.bf16.mxu1 %v1278_v47  ;;  %v107_v46 = vrot.slane %v102_v41, %v106_v39  ;;  %v115_v47 = vrot.slane %v102_v41, %v114_v40 }
  0x57   :  { %791 = vmatpush1.bf16.msra.mxu0 %v1273_v48  ;;  %834 = vmatpush1.bf16.msra.mxu1 %v1276_v49 }
  0x58   :  { %792 = vmatprep.subr.bf16.mxu0 %v1281_v50  ;;  %835 = vmatprep.subr.bf16.mxu1 %v1284_v51 }
  0x5b   :  { %793 = vmatpush1.bf16.msra.mxu0 %v1279_v52  ;;  %836 = vmatpush1.bf16.msra.mxu1 %v1282_v53 }
  0x5c   :  { %794 = vmatprep.subr.bf16.mxu0 %v1287_v54  ;;  %837 = vmatprep.subr.bf16.mxu1 %v1290_v55 }
  0x5f   :  { %795 = vmatpush1.bf16.msra.mxu0 %v1285_v56  ;;  %838 = vmatpush1.bf16.msra.mxu1 %v1288_v57 }
  0x60   :  { %796 = vmatprep.subr.bf16.mxu0 %v1293_v58  ;;  %839 = vmatprep.subr.bf16.mxu1 %v1296_v59 }
  0x63   :  { %797 = vmatpush1.bf16.msra.mxu0 %v1291_v60  ;;  %840 = vmatpush1.bf16.msra.mxu1 %v1294_v61 }
  0x64   :  { %798 = vmatprep.subr.bf16.mxu0 %v1299_v62  ;;  %841 = vmatprep.subr.bf16.mxu1 %v1302_v63 }
  0x67   :  { %799 = vmatpush1.bf16.msra.mxu0 %v1297_v0  ;;  %842 = vmatpush1.bf16.msra.mxu1 %v1300_v1 }
  0x68   :  { %800 = vmatprep.subr.bf16.mxu0 %v1305_v2  ;;  %843 = vmatprep.subr.bf16.mxu1 %v1308_v3 }
  0x6b   :  { %801 = vmatpush2.bf16.msra.mxu0 %v1303_v4  ;;  %844 = vmatpush2.bf16.msra.mxu1 %v1306_v5 }
  0x6c   :  { %802 = vmatprep.subr.bf16.mxu0 %v1311_v6  ;;  %845 = vmatprep.subr.bf16.mxu1 %v1314_v7 }
  0x6f   :  { %803 = vmatpush2.bf16.msra.mxu0 %v1309_v8  ;;  %846 = vmatpush2.bf16.msra.mxu1 %v1312_v9  ;;  %v1352_v8 = vld [vmem:[#allocation6 + $0x38] sm:$0xff]  }
  0x70   :  { %804 = vmatprep.subr.bf16.mxu0 %v1317_v10  ;;  %847 = vmatprep.subr.bf16.mxu1 %v1320_v11  ;;  %v1353_v11 = vld [vmem:[#allocation6 + $0x70] sm:$0xff]  }
  0x73   :  { %805 = vmatpush2.bf16.msra.mxu0 %v1315_v12  ;;  %848 = vmatpush2.bf16.msra.mxu1 %v1318_v13  ;;  %v1354_v12 = vld [vmem:[#allocation6 + $0x30] sm:$0xff]   ;;  %v1355_v13 = vld [vmem:[#allocation6 + $0x68] sm:$0xff]  }
  0x74   :  { %806 = vmatprep.subr.bf16.mxu0 %v1323_v14  ;;  %849 = vmatprep.subr.bf16.mxu1 %v1326_v15  ;;  %v1356_v14 = vld [vmem:[#allocation6 + $0x28] sm:$0xff]   ;;  %v1357_v15 = vld [vmem:[#allocation6 + $0x60] sm:$0xff]  }
  0x77   :  { %807 = vmatpush2.bf16.msra.mxu0 %v1321_v16  ;;  %850 = vmatpush2.bf16.msra.mxu1 %v1324_v17  ;;  %v1358_v16 = vld [vmem:[#allocation6 + $0x20] sm:$0xff]   ;;  %v1359_v17 = vld [vmem:[#allocation6 + $0x58] sm:$0xff]  }
  0x78   :  { %808 = vmatprep.subr.bf16.mxu0 %v1329_v18  ;;  %851 = vmatprep.subr.bf16.mxu1 %v1332_v19  ;;  %v1360_v18 = vld [vmem:[#allocation6 + $0x18] sm:$0xff]   ;;  %v1361_v19 = vld [vmem:[#allocation6 + $0x50] sm:$0xff]  }
  0x7b   :  { %809 = vmatpush2.bf16.msra.mxu0 %v1327_v20  ;;  %852 = vmatpush2.bf16.msra.mxu1 %v1330_v21  ;;  %v1362_v20 = vld [vmem:[#allocation6 + $0x10] sm:$0xff]   ;;  %v1363_v21 = vld [vmem:[#allocation6 + $0x48] sm:$0xff]  }
  0x7c   :  { %810 = vmatprep.subr.bf16.mxu0 %v1335_v22  ;;  %853 = vmatprep.subr.bf16.mxu1 %v1338_v23  ;;  %v1364_v22 = vld [vmem:[#allocation6 + $0x8] sm:$0xff]   ;;  %v1365_v23 = vld [vmem:[#allocation6 + $0x40] sm:$0xff]  }
  0x7f   :  { %811 = vmatpush2.bf16.msra.mxu0 %v1333_v24  ;;  %854 = vmatpush2.bf16.msra.mxu1 %v1336_v25  ;;  %v1366_v24 = vld [vmem:[#allocation6] sm:$0xff]  }
  0x80   :  { %812 = vmatprep.subr.bf16.mxu0 %v1341_v26  ;;  %855 = vmatprep.subr.bf16.mxu1 %v1344_v27  ;;  %v452_v25 = vld [vmem:[%s1526_s4] sm:$0x3] }
  0x81   :  { %v461_v26 = vrot.slane %v452_v25, %v110_v37  ;;  %v457_v27 = vrot.slane %v452_v25, %v106_v39 }
  0x83   :  { %813 = vmatpush2.bf16.msra.mxu0 %v1339_v28  ;;  %856 = vmatpush2.bf16.msra.mxu1 %v1342_v29 }
  0x84   :  { %814 = vmatprep.subr.bf16.mxu0 %v1347_v30  ;;  %857 = vmatprep.subr.bf16.mxu1 %v1350_v31 }
  0x87   :  { %815 = vmatpush2.bf16.msra.mxu0 %v1345_v32  ;;  %858 = vmatpush2.bf16.msra.mxu1 %v1348_v33 }
  0x88   :  { %1174 = vmatprep.subr.bf16.mxu0 %v1351_v34 }
 0x10a   :  { %v324_v42 = vpop.f32.mrf.mxu0  ;;  %v367_v43 = vpop.f32.mrf.mxu1 }
 0x10b   :  { %v325_v56 = vadd.f32 %v324_v42, %v107_v46  ;;  %v368_v57 = vadd.f32 %v367_v43, %v115_v47 }
 0x10c   :  { %v326_v48 = vpop.f32.mrf.mxu0  ;;  %v369_v49 = vpop.f32.mrf.mxu1 }
 0x10d   :  { %v327_v52 = vadd.f32 %v326_v48, %v111_v44  ;;  %v370_v53 = vadd.f32 %v369_v49, %v119_v45  ;;  %v376_v4 = vmax.f32 %v325_v56, 0.0  ;;  %v378_v5 = vmax.f32 %v368_v57, 0.0 }
 0x10e   :  { %v328_v50 = vpop.f32.mrf.mxu0  ;;  %v371_v51 = vpop.f32.mrf.mxu1 }
 0x10f   :  { %v329_v54 = vadd.f32 %v328_v50, %v107_v46  ;;  %v372_v55 = vadd.f32 %v371_v51, %v115_v47  ;;  %v377_v0 = vmax.f32 %v327_v52, 0.0  ;;  %v379_v1 = vmax.f32 %v370_v53, 0.0  ;;  %v1157_v51 = vld [vmem:[%s1528_s6] ss:$0 sm:$0xff] }
 0x110   :  { %v330_v58 = vpop.f32.mrf.mxu0  ;;  %v373_v59 = vpop.f32.mrf.mxu1 }
 0x111   :  { %v331_v60 = vadd.f32 %v330_v58, %v111_v44  ;;  %v374_v61 = vadd.f32 %v373_v59, %v119_v45  ;;  %v380_v62 = vmax.f32 %v329_v54, 0.0  ;;  %v382_v63 = vmax.f32 %v372_v55, 0.0 }
 0x113   :  { %v381_v2 = vmax.f32 %v331_v60, 0.0  ;;  %v383_v3 = vmax.f32 %v374_v61, 0.0  ;;  %v384_v9 = vpack.c.bf16 %v380_v62, %v376_v4  ;;  %v386_v10 = vpack.c.bf16 %v382_v63, %v378_v5 }
 0x115   :  { %v385_v6 = vpack.c.bf16 %v381_v2, %v377_v0  ;;  %v387_v7 = vpack.c.bf16 %v383_v3, %v379_v1 }
 0x117   :  { %816 = vmatprep.mubr.bf16.mxu0 %v385_v6  ;;  %859 = vmatprep.mubr.bf16.mxu1 %v387_v7 }
 0x118   :  { %817 = vmatmul.mubr.bf16.vlgmr.msra.gmra.mxu0 %v384_v9  ;;  %860 = vmatmul.mubr.bf16.vlgmr.msra.gmra.mxu1 %v386_v10 }
 0x119   :  { %1175 = vmatpush3.bf16.msra.mxu0 %v1352_v8 }
 0x11a   :  { %1176 = vmatprep.subr.bf16.mxu0 %v1353_v11 }
 0x11d   :  { %1177 = vmatpush3.bf16.msra.mxu0 %v1354_v12 }
 0x11e   :  { %1178 = vmatprep.subr.bf16.mxu0 %v1355_v13 }
 0x121   :  { %1179 = vmatpush3.bf16.msra.mxu0 %v1356_v14 }
 0x122   :  { %1180 = vmatprep.subr.bf16.mxu0 %v1357_v15 }
 0x125   :  { %1181 = vmatpush3.bf16.msra.mxu0 %v1358_v16 }
 0x126   :  { %1182 = vmatprep.subr.bf16.mxu0 %v1359_v17 }
 0x129   :  { %1183 = vmatpush3.bf16.msra.mxu0 %v1360_v18 }
 0x12a   :  { %1184 = vmatprep.subr.bf16.mxu0 %v1361_v19 }
 0x12d   :  { %1185 = vmatpush3.bf16.msra.mxu0 %v1362_v20 }
 0x12e   :  { %1186 = vmatprep.subr.bf16.mxu0 %v1363_v21 }
 0x131   :  { %1187 = vmatpush3.bf16.msra.mxu0 %v1364_v22 }
 0x132   :  { %1188 = vmatprep.subr.bf16.mxu0 %v1365_v23 }
 0x135   :  { %1189 = vmatpush3.bf16.msra.mxu0 %v1366_v24 }
 0x1d8   :  { %v818_v28 = vpop.f32.mrf.mxu0  ;;  %v861_v29 = vpop.f32.mrf.mxu1 }
 0x1d9   :  { %v819_v33 = vadd.f32 %v818_v28, %v457_v27 }
 0x1da   :  { %v820_v30 = vpop.f32.mrf.mxu0  ;;  %v863_v31 = vpop.f32.mrf.mxu1 }
 0x1db   :  { %v821_v32 = vadd.f32 %v820_v30, %v461_v26  ;;  %v862_v44 = vadd.f32 %v861_v29, %v819_v33 }
 0x1dc   :  { %v822_v34 = vpop.f32.mrf.mxu0  ;;  %v865_v35 = vpop.f32.mrf.mxu1 }
 0x1dd   :  { %v823_v38 = vadd.f32 %v822_v34, %v457_v27  ;;  %v864_v41 = vadd.f32 %v863_v31, %v821_v32  ;;  %v870_v39 = vmax.f32 %v862_v44, 0.0 }
 0x1de   :  { %v824_v40 = vpop.f32.mrf.mxu0  ;;  %v867_v45 = vpop.f32.mrf.mxu1 }
 0x1df   :  { %v866_v42 = vadd.f32 %v865_v35, %v823_v38  ;;  %v825_v43 = vadd.f32 %v824_v40, %v461_v26  ;;  %v871_v47 = vmax.f32 %v864_v41, 0.0 }
 0x1e1   :  { %v868_v46 = vadd.f32 %v867_v45, %v825_v43  ;;  %v872_v37 = vmax.f32 %v866_v42, 0.0 }
 0x1e3   :  { %v873_v36 = vmax.f32 %v868_v46, 0.0  ;;  %v874_v49 = vpack.c.bf16 %v872_v37, %v870_v39 }
 0x1e5   :  { %v875_v48 = vpack.c.bf16 %v873_v36, %v871_v47 }
 0x1e7   :  { %1043 = vmatprep.mubr.bf16.mxu0 %v875_v48 }
 0x1e8   :  { %1044 = vmatmul.mubr.bf16.vlgmr.msra.gmra.mxu0 %v874_v49 }
 0x2a8   :  { %v1190_v50 = vpop.f32.mrf.mxu0 }
 0x2aa   :  { %v1191_v52 = vpop.f32.mrf.mxu0 }
 0x2ab   :  { %v1192_v53 = vadd.f32 %v1191_v52, %v1190_v50 }
 0x2ac   :  { %v1193_v54 = vpop.f32.mrf.mxu0 }
 0x2ad   :  { %v1046_v55 = vadd.f32 %v1192_v53, %v1157_v51 }
 0x2ae   :  { %v1194_v56 = vpop.f32.mrf.mxu0 }
 0x2af   :  { %1052 = vst [vmem:[%s1529_s7] sm:$0xff] %v1046_v55  ;;  %v1195_v57 = vadd.f32 %v1194_v56, %v1193_v54 }
 0x2b1   :  { %v1049_v58 = vadd.f32 %v1195_v57, %v1157_v51 }
 0x2b3   :  { %1053 = vst [vmem:[%s1529_s7 + $0x8] sm:$0xff] %v1049_v58 }
 0x2b4   :  { %1058 = vsyncpa [#allocation3], 1 }
 0x2b5   :  { %1059 = vsyncpa [#allocation5], 1 }

</bundles_post_ra>
